<compile_context>
chip_gen: v6e
topology: v6e:2x2x1
jax: 0.10.0
libtpu: 0.0.40
codegen_flags: <defaults>
</compile_context>

<pallas_src>
import functools
import math

import jax
import jax.numpy as jnp
from jax import lax
from jax.experimental import pallas as pl
from jax.experimental.pallas import tpu as pltpu


# ----------------------------------------------------------------------------
# Fused, layer-streamed forward kernel
# ----------------------------------------------------------------------------
def _layernorm(x, g, b, eps=1e-5):
    mu = jnp.mean(x, axis=-1, keepdims=True)
    xc = x - mu
    var = jnp.mean(xc * xc, axis=-1, keepdims=True)
    return xc * lax.rsqrt(var + eps) * g + b


def fused_layer_kernel(
    # layer-invariant inputs (DMA'd once per batch block)
    x_ref,        # [bb, S, Din]
    pe_ref,       # [S, D]
    aemb_ref,     # [bb, 1, A]
    wemb_ref, bemb_ref,                                   # [Din, D], [1, D]
    # per-layer weights, streamed by the layer grid axis (views are squeezed)
    wq_ref, bq_ref, wk_ref, bk_ref,                       # [D, D], [1, D]
    wv_ref, bv_ref, wo_ref, bo_ref,
    g1_ref, be1_ref, w1_ref, b1_ref,                      # [1,D],[1,D],[D,F],[1,F]
    w2_ref, b2_ref, g2_ref, be2_ref,                      # [F,D],[1,D],[1,D],[1,D]
    # decoder heads (layer-invariant)
    wd1h_ref, wd1a_ref, bd1_ref, wd2_ref, bd2_ref,        # trajectory head
    wa1h_ref, wa1a_ref, ba1_ref, wa2_ref, ba2_ref,        # activities head
    # output
    out_ref,                                              # [bb, 1, traj_out + act_out]
    # scratch
    h_ref,        # [bb*S, D]  resident activation, carried across layer steps
    ctx_ref,      # [bb*S, D]  per-head context staging buffer
    *, num_heads, mm_dtype,
):
    layer = pl.program_id(1)
    n_layers = pl.num_programs(1)
    bb, seq, din = x_ref.shape
    d_model = wemb_ref.shape[1]
    d_head = d_model // num_heads
    scale = 1.0 / math.sqrt(d_head)

    def mm(a, w):
        # bf16 (or fp8 on v7x) operands with f32 accumulation when mm_dtype is
        # lowered; default f32 keeps exact parity with the reference.
        return jnp.dot(a.astype(mm_dtype), w.astype(mm_dtype),
                       preferred_element_type=jnp.float32)

    # --- layer 0: input embedding + positional encoding (broadcast, no tile) ---
    @pl.when(layer == 0)
    def _():
        x2 = x_ref[...].reshape(bb * seq, din)
        e = mm(x2, wemb_ref[...]) + bemb_ref[...]
        e = e.reshape(bb, seq, d_model) + pe_ref[...][None, :, :]
        h_ref[...] = e.reshape(bb * seq, d_model)

    # --- one encoder layer, using this grid step's streamed weights ---
    h = h_ref[...]
    q = (mm(h, wq_ref[...]) + bq_ref[...]) * scale        # 1/sqrt(dh) folded into q
    k = mm(h, wk_ref[...]) + bk_ref[...]
    v = mm(h, wv_ref[...]) + bv_ref[...]

    for hd in range(num_heads):
        sl = slice(hd * d_head, (hd + 1) * d_head)
        qh = q[:, sl].reshape(bb, seq, d_head)
        kh = k[:, sl].reshape(bb, seq, d_head)
        vh = v[:, sl].reshape(bb, seq, d_head)
        logits = jnp.einsum("bqd,bkd->bqk", qh.astype(mm_dtype), kh.astype(mm_dtype),
                            preferred_element_type=jnp.float32)
        logits = logits - jnp.max(logits, axis=-1, keepdims=True)
        p = jnp.exp(logits)
        attn = p * pl.reciprocal(jnp.sum(p, axis=-1, keepdims=True), approx=False)
        c = jnp.einsum("bqk,bkd->bqd", attn.astype(mm_dtype), vh.astype(mm_dtype),
                       preferred_element_type=jnp.float32)
        # stage this head's context into its lane slice; single full-width
        # K=d_model matmul against W_O afterwards (no per-head K=d_head matmuls)
        ctx_ref[:, sl] = c.reshape(bb * seq, d_head)

    attn_out = mm(ctx_ref[...], wo_ref[...]) + bo_ref[...]
    h = _layernorm(h + attn_out, g1_ref[...], be1_ref[...])

    h1 = jnp.maximum(mm(h, w1_ref[...]) + b1_ref[...], 0.0)
    ff = mm(h1, w2_ref[...]) + b2_ref[...]
    h = _layernorm(h + ff, g2_ref[...], be2_ref[...])
    h_ref[...] = h

    # --- last layer: mean-pool over time + both agent-conditioned heads ---
    @pl.when(layer == n_layers - 1)
    def _():
        hn = jnp.mean(h.reshape(bb, seq, d_model), axis=1)        # [bb, D]
        ae = aemb_ref[...].reshape(bb, -1)                         # [bb, A]

        ht = jnp.maximum(mm(hn, wd1h_ref[...]) + mm(ae, wd1a_ref[...])
                         + bd1_ref[...], 0.0)
        traj = mm(ht, wd2_ref[...]) + bd2_ref[...]

        ha = jnp.maximum(mm(hn, wa1h_ref[...]) + mm(ae, wa1a_ref[...])
                         + ba1_ref[...], 0.0)
        act = mm(ha, wa2_ref[...]) + ba2_ref[...]

        # single lane-contiguous output slab; split in the JAX wrapper
        out = jnp.concatenate([traj, act], axis=-1)
        out_ref[...] = out.reshape(bb, 1, -1)
    # TODO(synk): optional attention mask (masked_fill with -9e15) not plumbed;
    # the reference default (mask=None) is what this kernel implements.


# ----------------------------------------------------------------------------
# Parameter init (xavier-uniform weights, zero biases, LN gamma=1 beta=0)
# ----------------------------------------------------------------------------
def _xavier(key, shape):
    fan_out, fan_in = shape
    bound = math.sqrt(6.0 / (fan_in + fan_out))
    return jax.random.uniform(key, shape, jnp.float32, -bound, bound)


def init_params(key, *, d_model, num_heads, num_layers, input_dims,
                agent_classes, agent_emb_dim, act_classes, act_emb_dim, pred_len):
    d_ff = 2 * d_model
    n_keys = 3 + 6 * num_layers + 4
    ks = iter(jax.random.split(key, n_keys))
    p = {}
    # condition embedding tables
    p["agent_table"] = _xavier(next(ks), (agent_classes, agent_emb_dim))
    p["act_table"] = _xavier(next(ks), (act_classes, act_emb_dim))
    # emb_net
    p["w_emb_t"] = _xavier(next(ks), (d_model, input_dims)).T
    p["b_emb"] = jnp.zeros((1, d_model), jnp.float32)
    # transformer encoder layers, stacked along a leading layer axis
    p["WQ"] = jnp.stack([_xavier(next(ks), (d_model, d_model)).T for _ in range(num_layers)])
    p["WK"] = jnp.stack([_xavier(next(ks), (d_model, d_model)).T for _ in range(num_layers)])
    p["WV"] = jnp.stack([_xavier(next(ks), (d_model, d_model)).T for _ in range(num_layers)])
    p["WO"] = jnp.stack([_xavier(next(ks), (d_model, d_model)).T for _ in range(num_layers)])
    p["W1"] = jnp.stack([_xavier(next(ks), (d_ff, d_model)).T for _ in range(num_layers)])
    p["W2"] = jnp.stack([_xavier(next(ks), (d_model, d_ff)).T for _ in range(num_layers)])
    p["BQ"] = jnp.zeros((num_layers, 1, d_model), jnp.float32)
    p["BK"] = jnp.zeros((num_layers, 1, d_model), jnp.float32)
    p["BV"] = jnp.zeros((num_layers, 1, d_model), jnp.float32)
    p["BO"] = jnp.zeros((num_layers, 1, d_model), jnp.float32)
    p["B1"] = jnp.zeros((num_layers, 1, d_ff), jnp.float32)
    p["B2"] = jnp.zeros((num_layers, 1, d_model), jnp.float32)
    p["G1"] = jnp.ones((num_layers, 1, d_model), jnp.float32)
    p["BE1"] = jnp.zeros((num_layers, 1, d_model), jnp.float32)
    p["G2"] = jnp.ones((num_layers, 1, d_model), jnp.float32)
    p["BE2"] = jnp.zeros((num_layers, 1, d_model), jnp.float32)
    # decoder heads: Linear(d_model + agent_emb, inter) split into hn / agent parts
    inter = (d_model + agent_emb_dim) // 2
    wd1 = _xavier(next(ks), (inter, d_model + agent_emb_dim))
    p["wd1h_t"] = wd1[:, :d_model].T
    p["wd1a_t"] = wd1[:, d_model:].T
    p["bd1"] = jnp.zeros((1, inter), jnp.float32)
    p["wd2_t"] = _xavier(next(ks), (2 * pred_len, inter)).T
    p["bd2"] = jnp.zeros((1, 2 * pred_len), jnp.float32)
    wa1 = _xavier(next(ks), (inter, d_model + agent_emb_dim))
    p["wa1h_t"] = wa1[:, :d_model].T
    p["wa1a_t"] = wa1[:, d_model:].T
    p["ba1"] = jnp.zeros((1, inter), jnp.float32)
    p["wa2_t"] = _xavier(next(ks), (act_classes * pred_len, inter)).T
    p["ba2"] = jnp.zeros((1, act_classes * pred_len), jnp.float32)
    return p


def sinusoidal_pe(seq_len, d_model):
    pos = jnp.arange(seq_len, dtype=jnp.float32)[:, None]
    div = jnp.exp(
        jnp.arange(0, d_model, 2, dtype=jnp.float32) * (-math.log(10000.0) / d_model))
    pe = jnp.zeros((seq_len, d_model), jnp.float32)
    pe = pe.at[:, 0::2].set(jnp.sin(pos * div))
    pe = pe.at[:, 1::2].set(jnp.cos(pos * div))
    return pe


def _pick_block_b(b):
    # Prefer >= 2 batch blocks (v7x megacore / input-DMA pipelining) while
    # keeping each block as large as possible.
    if b >= 2 and b % 2 == 0:
        return b // 2
    return b


def _vmem_limit_bytes():
    # Generation-aware scoped-VMEM limit: ~3/4 of physical capacity
    # (v5e/v6e: 96 MiB, v7x: 48 MiB).  Fallback is safe on every generation.
    try:
        cap = int(pltpu.get_tpu_info().vmem_capacity_bytes)
    except Exception:
        cap = 64 * 1024 * 1024
    return (cap * 3) // 4


# ----------------------------------------------------------------------------
# Pallas forward wrapper + pure-JAX reference
# ----------------------------------------------------------------------------
def forward_pallas(x, params, *, d_model, num_heads, num_layers, act_classes,
                   block_b=None, mm_dtype=jnp.float32):
    # glue: feature concat + condition-embedding gathers (cheap, stays in XLA)
    scl = jnp.concatenate([f["scl_obs"] for f in x["features"].values()], axis=-1)
    act_emb = jnp.take(params["act_table"], x["action"], axis=0)        # [B,S,Ea]
    inputs = jnp.concatenate([scl, act_emb], axis=-1)                   # [B,S,Din]
    agent_emb = jnp.take(params["agent_table"], x["agent_type"][:, 0], axis=0)

    b, s, din = inputs.shape
    pe = sinusoidal_pe(s, d_model)                                      # [S, D]
    agent_dim = agent_emb.shape[-1]
    d_ff = params["W1"].shape[2]
    inter = params["wd1h_t"].shape[1]
    traj_out = params["wd2_t"].shape[1]
    act_out = params["wa2_t"].shape[1]
    dout = traj_out + act_out

    if block_b is None:
        block_b = _pick_block_b(b)
    assert b % block_b == 0
    nb = b // block_b

    # keep batch-block dim out of the (8,128)-checked trailing dims
    aemb3 = agent_emb.reshape(b, 1, agent_dim)

    kernel = functools.partial(fused_layer_kernel,
                               num_heads=num_heads, mm_dtype=mm_dtype)

    # --- BlockSpecs: layer-streamed weights, batch-blocked activations ---
    def _xmap(bi, li): return (bi, 0, 0)        # batch-blocked, layer-invariant
    def _wmap(bi, li): return (li, 0, 0)        # per-layer streamed (auto double-buffered)
    def _cmap(bi, li): return (0, 0)            # fully invariant
    # NOTE(v5e): with HBM at ~0.82 TB/s, add pipeline_mode=pl.Buffered(3) to
    # the weight BlockSpecs below if per-layer weight DMA shows up exposed.

    in_specs = [
        pl.BlockSpec((block_b, s, din), _xmap),                 # x
        pl.BlockSpec((s, d_model), _cmap),                      # pe
        pl.BlockSpec((block_b, 1, agent_dim), _xmap),           # agent emb
        pl.BlockSpec((din, d_model), _cmap),                    # w_emb
        pl.BlockSpec((1, d_model), _cmap),                      # b_emb
        pl.BlockSpec((None, d_model, d_model), _wmap),          # WQ
        pl.BlockSpec((None, 1, d_model), _wmap),                # BQ
        pl.BlockSpec((None, d_model, d_model), _wmap),          # WK
        pl.BlockSpec((None, 1, d_model), _wmap),                # BK
        pl.BlockSpec((None, d_model, d_model), _wmap),          # WV
        pl.BlockSpec((None, 1, d_model), _wmap),                # BV
        pl.BlockSpec((None, d_model, d_model), _wmap),          # WO
        pl.BlockSpec((None, 1, d_model), _wmap),                # BO
        pl.BlockSpec((None, 1, d_model), _wmap),                # G1
        pl.BlockSpec((None, 1, d_model), _wmap),                # BE1
        pl.BlockSpec((None, d_model, d_ff), _wmap),             # W1
        pl.BlockSpec((None, 1, d_ff), _wmap),                   # B1
        pl.BlockSpec((None, d_ff, d_model), _wmap),             # W2
        pl.BlockSpec((None, 1, d_model), _wmap),                # B2
        pl.BlockSpec((None, 1, d_model), _wmap),                # G2
        pl.BlockSpec((None, 1, d_model), _wmap),                # BE2
        pl.BlockSpec((d_model, inter), _cmap),                  # wd1h
        pl.BlockSpec((agent_dim, inter), _cmap),                # wd1a
        pl.BlockSpec((1, inter), _cmap),                        # bd1
        pl.BlockSpec((inter, traj_out), _cmap),                 # wd2
        pl.BlockSpec((1, traj_out), _cmap),                     # bd2
        pl.BlockSpec((d_model, inter), _cmap),                  # wa1h
        pl.BlockSpec((agent_dim, inter), _cmap),                # wa1a
        pl.BlockSpec((1, inter), _cmap),                        # ba1
        pl.BlockSpec((inter, act_out), _cmap),                  # wa2
        pl.BlockSpec((1, act_out), _cmap),                      # ba2
    ]
    out_specs = pl.BlockSpec((block_b, 1, dout), _xmap)
    scratch_shapes = [
        pltpu.VMEM((block_b * s, d_model), jnp.float32),        # resident h
        pltpu.VMEM((block_b * s, d_model), jnp.float32),        # per-head ctx staging
    ]

    # advisory cost estimate so XLA overlaps the surrounding gathers/concats
    flops = 2 * b * s * din * d_model
    flops += num_layers * (8 * b * s * d_model * d_model        # q/k/v proj + ctx@WO
                           + 4 * b * s * s * d_model            # logits + attn@V
                           + 4 * b * s * d_model * d_ff)        # FFN
    flops += 4 * b * (d_model + agent_dim) * inter + 4 * b * inter * dout
    transcendentals = num_layers * num_heads * b * s * s        # softmax exp
    args = (inputs, pe, aemb3,
            params["w_emb_t"], params["b_emb"],
            params["WQ"], params["BQ"], params["WK"], params["BK"],
            params["WV"], params["BV"], params["WO"], params["BO"],
            params["G1"], params["BE1"], params["W1"], params["B1"],
            params["W2"], params["B2"], params["G2"], params["BE2"],
            params["wd1h_t"], params["wd1a_t"], params["bd1"],
            params["wd2_t"], params["bd2"],
            params["wa1h_t"], params["wa1a_t"], params["ba1"],
            params["wa2_t"], params["ba2"])
    bytes_accessed = sum(int(a.size) * 4 for a in args) + b * dout * 4
    cost = pl.CostEstimate(flops=int(flops), transcendentals=int(transcendentals),
                           bytes_accessed=int(bytes_accessed))

    out = pl.pallas_call(
        kernel,
        out_shape=jax.ShapeDtypeStruct((b, 1, dout), jnp.float32),
        grid_spec=pltpu.PrefetchScalarGridSpec(
            num_scalar_prefetch=0,
            grid=(nb, num_layers),
            in_specs=in_specs,
            out_specs=out_specs,
            scratch_shapes=scratch_shapes),
        compiler_params=pltpu.CompilerParams(
            dimension_semantics=("parallel", "arbitrary"),
            vmem_limit_bytes=_vmem_limit_bytes()),
        cost_estimate=cost,
    )(*args)

    out = out.reshape(b, dout)
    traj = out[:, :traj_out].reshape(b, -1, 2)
    act = out[:, traj_out:].reshape(b, -1, act_classes)
    return traj, act


def forward_ref(x, params, *, d_model, num_heads, num_layers, act_classes):
    scl = jnp.concatenate([f["scl_obs"] for f in x["features"].values()], axis=-1)
    act_emb = jnp.take(params["act_table"], x["action"], axis=0)
    inputs = jnp.concatenate([scl, act_emb], axis=-1)
    agent_emb = jnp.take(params["agent_table"], x["agent_type"][:, 0], axis=0)
    b, s, _ = inputs.shape
    pe = sinusoidal_pe(s, d_model)

    h = inputs @ params["w_emb_t"] + params["b_emb"] + pe[None]
    dh = d_model // num_heads
    for l in range(num_layers):
        q = h @ params["WQ"][l] + params["BQ"][l]
        k = h @ params["WK"][l] + params["BK"][l]
        v = h @ params["WV"][l] + params["BV"][l]
        q = q.reshape(b, s, num_heads, dh).transpose(0, 2, 1, 3)
        k = k.reshape(b, s, num_heads, dh).transpose(0, 2, 1, 3)
        v = v.reshape(b, s, num_heads, dh).transpose(0, 2, 1, 3)
        logits = jnp.einsum("bhqd,bhkd->bhqk", q, k) / math.sqrt(dh)
        attn = jax.nn.softmax(logits, axis=-1)
        vals = jnp.einsum("bhqk,bhkd->bhqd", attn, v).transpose(0, 2, 1, 3).reshape(b, s, d_model)
        h = h + (vals @ params["WO"][l] + params["BO"][l])
        mu = h.mean(-1, keepdims=True)
        h = (h - mu) / jnp.sqrt(((h - mu) ** 2).mean(-1, keepdims=True) + 1e-5) \
            * params["G1"][l] + params["BE1"][l]
        ff = jnp.maximum(h @ params["W1"][l] + params["B1"][l], 0.0) @ params["W2"][l] + params["B2"][l]
        h = h + ff
        mu = h.mean(-1, keepdims=True)
        h = (h - mu) / jnp.sqrt(((h - mu) ** 2).mean(-1, keepdims=True) + 1e-5) \
            * params["G2"][l] + params["BE2"][l]
    hn = h.mean(axis=1)
    ht = jnp.maximum(hn @ params["wd1h_t"] + agent_emb @ params["wd1a_t"] + params["bd1"], 0.0)
    traj = ht @ params["wd2_t"] + params["bd2"]
    ha = jnp.maximum(hn @ params["wa1h_t"] + agent_emb @ params["wa1a_t"] + params["ba1"], 0.0)
    act = ha @ params["wa2_t"] + params["ba2"]
    return traj.reshape(b, -1, 2), act.reshape(b, -1, act_classes)


if __name__ == "__main__":
    # small config consistent with the module
    B, S = 2, 8
    D_MODEL, NUM_HEADS, NUM_LAYERS = 32, 4, 2
    PRED_LEN = 4
    AGENT_CLASSES, AGENT_EMB = 5, 8     # agent_type condition: embedding
    ACT_CLASSES, ACT_EMB = 6, 4         # action condition: embedding
    N_FEATURES = 2                      # e.g. input_type = ["positions", "velocities"]
    INPUT_DIMS = 2 * N_FEATURES + ACT_EMB

    key = jax.random.PRNGKey(0)
    kp, kf1, kf2, ka, kg = jax.random.split(key, 5)

    params = init_params(
        kp, d_model=D_MODEL, num_heads=NUM_HEADS, num_layers=NUM_LAYERS,
        input_dims=INPUT_DIMS, agent_classes=AGENT_CLASSES, agent_emb_dim=AGENT_EMB,
        act_classes=ACT_CLASSES, act_emb_dim=ACT_EMB, pred_len=PRED_LEN,
    )

    x = {
        "features": {
            "positions": {"scl_obs": jax.random.normal(kf1, (B, S, 2), jnp.float32)},
            "velocities": {"scl_obs": jax.random.normal(kf2, (B, S, 2), jnp.float32)},
        },
        "action": jax.random.randint(ka, (B, S), 0, ACT_CLASSES),
        "agent_type": jax.random.randint(kg, (B, S), 0, AGENT_CLASSES),
    }

    traj_pred, act_pred = forward_pallas(
        x, params, d_model=D_MODEL, num_heads=NUM_HEADS,
        num_layers=NUM_LAYERS, act_classes=ACT_CLASSES,
    )
    traj_pred = jax.block_until_ready(traj_pred)
    act_pred = jax.block_until_ready(act_pred)

    traj_ref, act_ref = forward_ref(
        x, params, d_model=D_MODEL, num_heads=NUM_HEADS,
        num_layers=NUM_LAYERS, act_classes=ACT_CLASSES,
    )

    assert traj_pred.shape == (B, PRED_LEN, 2), traj_pred.shape
    assert act_pred.shape == (B, PRED_LEN, ACT_CLASSES), act_pred.shape
    assert jnp.allclose(traj_pred, traj_ref, atol=1e-4, rtol=1e-4)
    assert jnp.allclose(act_pred, act_ref, atol=1e-4, rtol=1e-4)
    print("KERNEL_OK")
</pallas_src>

<mosaic_0001>
module attributes {stable_mosaic.version = 11 : i64} {
  func.func @fused_layer_kernel(%arg0: i32, %arg1: i32, %arg2: memref<1x8x8xf32, #tpu.memory_space<vmem>>, %arg3: memref<8x32xf32, #tpu.memory_space<vmem>>, %arg4: memref<1x1x8xf32, #tpu.memory_space<vmem>>, %arg5: memref<8x32xf32, #tpu.memory_space<vmem>>, %arg6: memref<1x32xf32, #tpu.memory_space<vmem>>, %arg7: memref<1x32x32xf32, #tpu.memory_space<vmem>>, %arg8: memref<1x1x32xf32, #tpu.memory_space<vmem>>, %arg9: memref<1x32x32xf32, #tpu.memory_space<vmem>>, %arg10: memref<1x1x32xf32, #tpu.memory_space<vmem>>, %arg11: memref<1x32x32xf32, #tpu.memory_space<vmem>>, %arg12: memref<1x1x32xf32, #tpu.memory_space<vmem>>, %arg13: memref<1x32x32xf32, #tpu.memory_space<vmem>>, %arg14: memref<1x1x32xf32, #tpu.memory_space<vmem>>, %arg15: memref<1x1x32xf32, #tpu.memory_space<vmem>>, %arg16: memref<1x1x32xf32, #tpu.memory_space<vmem>>, %arg17: memref<1x32x64xf32, #tpu.memory_space<vmem>>, %arg18: memref<1x1x64xf32, #tpu.memory_space<vmem>>, %arg19: memref<1x64x32xf32, #tpu.memory_space<vmem>>, %arg20: memref<1x1x32xf32, #tpu.memory_space<vmem>>, %arg21: memref<1x1x32xf32, #tpu.memory_space<vmem>>, %arg22: memref<1x1x32xf32, #tpu.memory_space<vmem>>, %arg23: memref<32x20xf32, #tpu.memory_space<vmem>>, %arg24: memref<8x20xf32, #tpu.memory_space<vmem>>, %arg25: memref<1x20xf32, #tpu.memory_space<vmem>>, %arg26: memref<20x8xf32, #tpu.memory_space<vmem>>, %arg27: memref<1x8xf32, #tpu.memory_space<vmem>>, %arg28: memref<32x20xf32, #tpu.memory_space<vmem>>, %arg29: memref<8x20xf32, #tpu.memory_space<vmem>>, %arg30: memref<1x20xf32, #tpu.memory_space<vmem>>, %arg31: memref<20x24xf32, #tpu.memory_space<vmem>>, %arg32: memref<1x24xf32, #tpu.memory_space<vmem>>, %arg33: memref<1x1x32xf32, #tpu.memory_space<vmem>>, %arg34: memref<8x32xf32, #tpu.memory_space<vmem>>, %arg35: memref<8x32xf32, #tpu.memory_space<vmem>>) attributes {dimension_semantics = [#tpu.dimension_semantics<parallel>, #tpu.dimension_semantics<arbitrary>], iteration_bounds = array<i64: 2, 2>, scalar_prefetch = 0 : i64, scratch_operands = 2 : i64, tpu.core_type = #tpu.core_type<tc>, window_params = [{transform_indices = @transform_0, window_bounds = array<i64: 1, 8, 8>}, {pipeline_mode = #tpu.pipeline_mode<synchronous>, transform_indices = @transform_1, window_bounds = array<i64: 8, 32>}, {transform_indices = @transform_2, window_bounds = array<i64: 1, 1, 8>}, {pipeline_mode = #tpu.pipeline_mode<synchronous>, transform_indices = @transform_3, window_bounds = array<i64: 8, 32>}, {pipeline_mode = #tpu.pipeline_mode<synchronous>, transform_indices = @transform_4, window_bounds = array<i64: 1, 32>}, {transform_indices = @transform_5, window_bounds = array<i64: 1, 32, 32>}, {transform_indices = @transform_6, window_bounds = array<i64: 1, 1, 32>}, {transform_indices = @transform_7, window_bounds = array<i64: 1, 32, 32>}, {transform_indices = @transform_8, window_bounds = array<i64: 1, 1, 32>}, {transform_indices = @transform_9, window_bounds = array<i64: 1, 32, 32>}, {transform_indices = @transform_10, window_bounds = array<i64: 1, 1, 32>}, {transform_indices = @transform_11, window_bounds = array<i64: 1, 32, 32>}, {transform_indices = @transform_12, window_bounds = array<i64: 1, 1, 32>}, {transform_indices = @transform_13, window_bounds = array<i64: 1, 1, 32>}, {transform_indices = @transform_14, window_bounds = array<i64: 1, 1, 32>}, {transform_indices = @transform_15, window_bounds = array<i64: 1, 32, 64>}, {transform_indices = @transform_16, window_bounds = array<i64: 1, 1, 64>}, {transform_indices = @transform_17, window_bounds = array<i64: 1, 64, 32>}, {transform_indices = @transform_18, window_bounds = array<i64: 1, 1, 32>}, {transform_indices = @transform_19, window_bounds = array<i64: 1, 1, 32>}, {transform_indices = @transform_20, window_bounds = array<i64: 1, 1, 32>}, {pipeline_mode = #tpu.pipeline_mode<synchronous>, transform_indices = @transform_21, window_bounds = array<i64: 32, 20>}, {pipeline_mode = #tpu.pipeline_mode<synchronous>, transform_indices = @transform_22, window_bounds = array<i64: 8, 20>}, {pipeline_mode = #tpu.pipeline_mode<synchronous>, transform_indices = @transform_23, window_bounds = array<i64: 1, 20>}, {pipeline_mode = #tpu.pipeline_mode<synchronous>, transform_indices = @transform_24, window_bounds = array<i64: 20, 8>}, {pipeline_mode = #tpu.pipeline_mode<synchronous>, transform_indices = @transform_25, window_bounds = array<i64: 1, 8>}, {pipeline_mode = #tpu.pipeline_mode<synchronous>, transform_indices = @transform_26, window_bounds = array<i64: 32, 20>}, {pipeline_mode = #tpu.pipeline_mode<synchronous>, transform_indices = @transform_27, window_bounds = array<i64: 8, 20>}, {pipeline_mode = #tpu.pipeline_mode<synchronous>, transform_indices = @transform_28, window_bounds = array<i64: 1, 20>}, {pipeline_mode = #tpu.pipeline_mode<synchronous>, transform_indices = @transform_29, window_bounds = array<i64: 20, 24>}, {pipeline_mode = #tpu.pipeline_mode<synchronous>, transform_indices = @transform_30, window_bounds = array<i64: 1, 24>}, {transform_indices = @transform_31, window_bounds = array<i64: 1, 1, 32>}]} {
    %c0_i32 = arith.constant 0 : i32
    %0 = arith.cmpi eq, %arg1, %c0_i32 : i32
    %1 = arith.extui %0 : i1 to i32
    %c0_i32_0 = arith.constant 0 : i32
    %2 = arith.cmpi ne, %1, %c0_i32_0 : i32
    scf.if %2 {
      %c0_93 = arith.constant 0 : index
      %c0_94 = arith.constant 0 : index
      %c0_95 = arith.constant 0 : index
      %185 = vector.load %arg2[%c0_93, %c0_94, %c0_95] : memref<1x8x8xf32, #tpu.memory_space<vmem>>, vector<1x8x8xf32>
      %186 = vector.shape_cast %185 : vector<1x8x8xf32> to vector<8x8xf32>
      %c0_96 = arith.constant 0 : index
      %c0_97 = arith.constant 0 : index
      %187 = vector.load %arg5[%c0_96, %c0_97] : memref<8x32xf32, #tpu.memory_space<vmem>>, vector<8x32xf32>
      %cst_98 = arith.constant dense<0.000000e+00> : vector<8x32xf32>
      %188 = tpu.matmul %186, %187, %cst_98 {dimension_numbers = #tpu.dot_dimension_numbers<[1], [0], [0], [1], [0, 0, 1, 1], [], []>} : vector<8x8xf32>, vector<8x32xf32>, vector<8x32xf32> -> vector<8x32xf32>
      %c0_99 = arith.constant 0 : index
      %c0_100 = arith.constant 0 : index
      %189 = vector.load %arg6[%c0_99, %c0_100] : memref<1x32xf32, #tpu.memory_space<vmem>>, vector<1x32xf32>
      %190 = vector.broadcast %189 : vector<1x32xf32> to vector<8x32xf32>
      %191 = arith.addf %188, %190 : vector<8x32xf32>
      %192 = vector.shape_cast %191 : vector<8x32xf32> to vector<1x8x32xf32>
      %c0_101 = arith.constant 0 : index
      %c0_102 = arith.constant 0 : index
      %193 = vector.load %arg3[%c0_101, %c0_102] : memref<8x32xf32, #tpu.memory_space<vmem>>, vector<8x32xf32>
      %194 = vector.shape_cast %193 : vector<8x32xf32> to vector<1x8x32xf32>
      %195 = arith.addf %192, %194 : vector<1x8x32xf32>
      %196 = vector.shape_cast %195 : vector<1x8x32xf32> to vector<8x32xf32>
      %c0_103 = arith.constant 0 : index
      %c0_104 = arith.constant 0 : index
      %197 = vector.load %arg34[%c0_103, %c0_104] : memref<8x32xf32, #tpu.memory_space<vmem>>, vector<8x32xf32>
      tpu.vector_store %arg34[%c0_103, %c0_104], %196 {strides = array<i32>} : memref<8x32xf32, #tpu.memory_space<vmem>>, vector<8x32xf32>,
    } else {
    }
    %c0 = arith.constant 0 : index
    %c0_1 = arith.constant 0 : index
    %3 = vector.load %arg34[%c0, %c0_1] : memref<8x32xf32, #tpu.memory_space<vmem>>, vector<8x32xf32>
    %c0_2 = arith.constant 0 : index
    %c0_3 = arith.constant 0 : index
    %c0_4 = arith.constant 0 : index
    %4 = vector.load %arg7[%c0_2, %c0_3, %c0_4] : memref<1x32x32xf32, #tpu.memory_space<vmem>>, vector<1x32x32xf32>
    %5 = vector.shape_cast %4 : vector<1x32x32xf32> to vector<32x32xf32>
    %cst = arith.constant dense<0.000000e+00> : vector<8x32xf32>
    %6 = tpu.matmul %3, %5, %cst {dimension_numbers = #tpu.dot_dimension_numbers<[1], [0], [0], [1], [0, 0, 1, 1], [], []>} : vector<8x32xf32>, vector<32x32xf32>, vector<8x32xf32> -> vector<8x32xf32>
    %c0_5 = arith.constant 0 : index
    %c0_6 = arith.constant 0 : index
    %c0_7 = arith.constant 0 : index
    %7 = vector.load %arg8[%c0_5, %c0_6, %c0_7] : memref<1x1x32xf32, #tpu.memory_space<vmem>>, vector<1x1x32xf32>
    %8 = vector.shape_cast %7 : vector<1x1x32xf32> to vector<1x32xf32>
    %9 = vector.broadcast %8 : vector<1x32xf32> to vector<8x32xf32>
    %10 = arith.addf %6, %9 : vector<8x32xf32>
    %cst_8 = arith.constant 0.353553385 : f32
    %11 = vector.broadcast %cst_8 : f32 to vector<8x32xf32>
    %12 = arith.mulf %10, %11 : vector<8x32xf32>
    %c0_9 = arith.constant 0 : index
    %c0_10 = arith.constant 0 : index
    %c0_11 = arith.constant 0 : index
    %13 = vector.load %arg9[%c0_9, %c0_10, %c0_11] : memref<1x32x32xf32, #tpu.memory_space<vmem>>, vector<1x32x32xf32>
    %14 = vector.shape_cast %13 : vector<1x32x32xf32> to vector<32x32xf32>
    %cst_12 = arith.constant dense<0.000000e+00> : vector<8x32xf32>
    %15 = tpu.matmul %3, %14, %cst_12 {dimension_numbers = #tpu.dot_dimension_numbers<[1], [0], [0], [1], [0, 0, 1, 1], [], []>} : vector<8x32xf32>, vector<32x32xf32>, vector<8x32xf32> -> vector<8x32xf32>
    %c0_13 = arith.constant 0 : index
    %c0_14 = arith.constant 0 : index
    %c0_15 = arith.constant 0 : index
    %16 = vector.load %arg10[%c0_13, %c0_14, %c0_15] : memref<1x1x32xf32, #tpu.memory_space<vmem>>, vector<1x1x32xf32>
    %17 = vector.shape_cast %16 : vector<1x1x32xf32> to vector<1x32xf32>
    %18 = vector.broadcast %17 : vector<1x32xf32> to vector<8x32xf32>
    %19 = arith.addf %15, %18 : vector<8x32xf32>
    %c0_16 = arith.constant 0 : index
    %c0_17 = arith.constant 0 : index
    %c0_18 = arith.constant 0 : index
    %20 = vector.load %arg11[%c0_16, %c0_17, %c0_18] : memref<1x32x32xf32, #tpu.memory_space<vmem>>, vector<1x32x32xf32>
    %21 = vector.shape_cast %20 : vector<1x32x32xf32> to vector<32x32xf32>
    %cst_19 = arith.constant dense<0.000000e+00> : vector<8x32xf32>
    %22 = tpu.matmul %3, %21, %cst_19 {dimension_numbers = #tpu.dot_dimension_numbers<[1], [0], [0], [1], [0, 0, 1, 1], [], []>} : vector<8x32xf32>, vector<32x32xf32>, vector<8x32xf32> -> vector<8x32xf32>
    %c0_20 = arith.constant 0 : index
    %c0_21 = arith.constant 0 : index
    %c0_22 = arith.constant 0 : index
    %23 = vector.load %arg12[%c0_20, %c0_21, %c0_22] : memref<1x1x32xf32, #tpu.memory_space<vmem>>, vector<1x1x32xf32>
    %24 = vector.shape_cast %23 : vector<1x1x32xf32> to vector<1x32xf32>
    %25 = vector.broadcast %24 : vector<1x32xf32> to vector<8x32xf32>
    %26 = arith.addf %22, %25 : vector<8x32xf32>
    %27 = vector.extract_strided_slice %12 {offsets = [0, 0], sizes = [8, 8], strides = [1, 1]} : vector<8x32xf32> to vector<8x8xf32>
    %28 = vector.shape_cast %27 : vector<8x8xf32> to vector<1x8x8xf32>
    %29 = vector.extract_strided_slice %19 {offsets = [0, 0], sizes = [8, 8], strides = [1, 1]} : vector<8x32xf32> to vector<8x8xf32>
    %30 = vector.shape_cast %29 : vector<8x8xf32> to vector<1x8x8xf32>
    %31 = vector.extract_strided_slice %26 {offsets = [0, 0], sizes = [8, 8], strides = [1, 1]} : vector<8x32xf32> to vector<8x8xf32>
    %32 = vector.shape_cast %31 : vector<8x8xf32> to vector<1x8x8xf32>
    "tpu.trace_start"() <{level = 10 : i32, message = "bqd,bkd->bqk"}> : () -> ()
    %cst_23 = arith.constant dense<0.000000e+00> : vector<1x8x8xf32>
    %33 = tpu.matmul %28, %30, %cst_23 {dimension_numbers = #tpu.dot_dimension_numbers<[2], [2], [1], [1], [0, 0, 0, 1, 1, 1], [0], [0]>} : vector<1x8x8xf32>, vector<1x8x8xf32>, vector<1x8x8xf32> -> vector<1x8x8xf32>
    "tpu.trace_stop"() : () -> ()
    %cst_24 = arith.constant dense<0xFF800000> : vector<1x8xf32>
    %34 = vector.multi_reduction <maximumf>, %33, %cst_24 [2] : vector<1x8x8xf32> to vector<1x8xf32>
    %35 = vector.shape_cast %34 : vector<1x8xf32> to vector<1x8x1xf32>
    %36 = vector.broadcast %35 : vector<1x8x1xf32> to vector<1x8x8xf32>
    %37 = arith.subf %33, %36 : vector<1x8x8xf32>
    %38 = math.exp %37 : vector<1x8x8xf32>
    %cst_25 = arith.constant dense<0.000000e+00> : vector<1x8xf32>
    %39 = vector.multi_reduction <add>, %38, %cst_25 [2] : vector<1x8x8xf32> to vector<1x8xf32>
    %40 = vector.shape_cast %39 : vector<1x8xf32> to vector<1x8x1xf32>
    %41 = tpu.reciprocal %40 : vector<1x8x1xf32> -> vector<1x8x1xf32>
    %42 = vector.broadcast %41 : vector<1x8x1xf32> to vector<1x8x8xf32>
    %43 = arith.mulf %38, %42 : vector<1x8x8xf32>
    "tpu.trace_start"() <{level = 10 : i32, message = "bqk,bkd->bqd"}> : () -> ()
    %cst_26 = arith.constant dense<0.000000e+00> : vector<1x8x8xf32>
    %44 = tpu.matmul %43, %32, %cst_26 {dimension_numbers = #tpu.dot_dimension_numbers<[2], [1], [1], [2], [0, 0, 0, 1, 1, 2], [0], [0]>} : vector<1x8x8xf32>, vector<1x8x8xf32>, vector<1x8x8xf32> -> vector<1x8x8xf32>
    "tpu.trace_stop"() : () -> ()
    %45 = vector.shape_cast %44 : vector<1x8x8xf32> to vector<8x8xf32>
    %c0_27 = arith.constant 0 : index
    %c0_28 = arith.constant 0 : index
    %46 = vector.load %arg35[%c0_27, %c0_28] : memref<8x32xf32, #tpu.memory_space<vmem>>, vector<8x8xf32>
    tpu.vector_store %arg35[%c0_27, %c0_28], %45 {strides = array<i32>} : memref<8x32xf32, #tpu.memory_space<vmem>>, vector<8x8xf32>,
    %47 = vector.extract_strided_slice %12 {offsets = [0, 8], sizes = [8, 8], strides = [1, 1]} : vector<8x32xf32> to vector<8x8xf32>
    %48 = vector.shape_cast %47 : vector<8x8xf32> to vector<1x8x8xf32>
    %49 = vector.extract_strided_slice %19 {offsets = [0, 8], sizes = [8, 8], strides = [1, 1]} : vector<8x32xf32> to vector<8x8xf32>
    %50 = vector.shape_cast %49 : vector<8x8xf32> to vector<1x8x8xf32>
    %51 = vector.extract_strided_slice %26 {offsets = [0, 8], sizes = [8, 8], strides = [1, 1]} : vector<8x32xf32> to vector<8x8xf32>
    %52 = vector.shape_cast %51 : vector<8x8xf32> to vector<1x8x8xf32>
    "tpu.trace_start"() <{level = 10 : i32, message = "bqd,bkd->bqk"}> : () -> ()
    %cst_29 = arith.constant dense<0.000000e+00> : vector<1x8x8xf32>
    %53 = tpu.matmul %48, %50, %cst_29 {dimension_numbers = #tpu.dot_dimension_numbers<[2], [2], [1], [1], [0, 0, 0, 1, 1, 1], [0], [0]>} : vector<1x8x8xf32>, vector<1x8x8xf32>, vector<1x8x8xf32> -> vector<1x8x8xf32>
    "tpu.trace_stop"() : () -> ()
    %cst_30 = arith.constant dense<0xFF800000> : vector<1x8xf32>
    %54 = vector.multi_reduction <maximumf>, %53, %cst_30 [2] : vector<1x8x8xf32> to vector<1x8xf32>
    %55 = vector.shape_cast %54 : vector<1x8xf32> to vector<1x8x1xf32>
    %56 = vector.broadcast %55 : vector<1x8x1xf32> to vector<1x8x8xf32>
    %57 = arith.subf %53, %56 : vector<1x8x8xf32>
    %58 = math.exp %57 : vector<1x8x8xf32>
    %cst_31 = arith.constant dense<0.000000e+00> : vector<1x8xf32>
    %59 = vector.multi_reduction <add>, %58, %cst_31 [2] : vector<1x8x8xf32> to vector<1x8xf32>
    %60 = vector.shape_cast %59 : vector<1x8xf32> to vector<1x8x1xf32>
    %61 = tpu.reciprocal %60 : vector<1x8x1xf32> -> vector<1x8x1xf32>
    %62 = vector.broadcast %61 : vector<1x8x1xf32> to vector<1x8x8xf32>
    %63 = arith.mulf %58, %62 : vector<1x8x8xf32>
    "tpu.trace_start"() <{level = 10 : i32, message = "bqk,bkd->bqd"}> : () -> ()
    %cst_32 = arith.constant dense<0.000000e+00> : vector<1x8x8xf32>
    %64 = tpu.matmul %63, %52, %cst_32 {dimension_numbers = #tpu.dot_dimension_numbers<[2], [1], [1], [2], [0, 0, 0, 1, 1, 2], [0], [0]>} : vector<1x8x8xf32>, vector<1x8x8xf32>, vector<1x8x8xf32> -> vector<1x8x8xf32>
    "tpu.trace_stop"() : () -> ()
    %65 = vector.shape_cast %64 : vector<1x8x8xf32> to vector<8x8xf32>
    %c0_33 = arith.constant 0 : index
    %c8 = arith.constant 8 : index
    %66 = vector.load %arg35[%c0_33, %c8] : memref<8x32xf32, #tpu.memory_space<vmem>>, vector<8x8xf32>
    tpu.vector_store %arg35[%c0_33, %c8], %65 {strides = array<i32>} : memref<8x32xf32, #tpu.memory_space<vmem>>, vector<8x8xf32>,
    %67 = vector.extract_strided_slice %12 {offsets = [0, 16], sizes = [8, 8], strides = [1, 1]} : vector<8x32xf32> to vector<8x8xf32>
    %68 = vector.shape_cast %67 : vector<8x8xf32> to vector<1x8x8xf32>
    %69 = vector.extract_strided_slice %19 {offsets = [0, 16], sizes = [8, 8], strides = [1, 1]} : vector<8x32xf32> to vector<8x8xf32>
    %70 = vector.shape_cast %69 : vector<8x8xf32> to vector<1x8x8xf32>
    %71 = vector.extract_strided_slice %26 {offsets = [0, 16], sizes = [8, 8], strides = [1, 1]} : vector<8x32xf32> to vector<8x8xf32>
    %72 = vector.shape_cast %71 : vector<8x8xf32> to vector<1x8x8xf32>
    "tpu.trace_start"() <{level = 10 : i32, message = "bqd,bkd->bqk"}> : () -> ()
    %cst_34 = arith.constant dense<0.000000e+00> : vector<1x8x8xf32>
    %73 = tpu.matmul %68, %70, %cst_34 {dimension_numbers = #tpu.dot_dimension_numbers<[2], [2], [1], [1], [0, 0, 0, 1, 1, 1], [0], [0]>} : vector<1x8x8xf32>, vector<1x8x8xf32>, vector<1x8x8xf32> -> vector<1x8x8xf32>
    "tpu.trace_stop"() : () -> ()
    %cst_35 = arith.constant dense<0xFF800000> : vector<1x8xf32>
    %74 = vector.multi_reduction <maximumf>, %73, %cst_35 [2] : vector<1x8x8xf32> to vector<1x8xf32>
    %75 = vector.shape_cast %74 : vector<1x8xf32> to vector<1x8x1xf32>
    %76 = vector.broadcast %75 : vector<1x8x1xf32> to vector<1x8x8xf32>
    %77 = arith.subf %73, %76 : vector<1x8x8xf32>
    %78 = math.exp %77 : vector<1x8x8xf32>
    %cst_36 = arith.constant dense<0.000000e+00> : vector<1x8xf32>
    %79 = vector.multi_reduction <add>, %78, %cst_36 [2] : vector<1x8x8xf32> to vector<1x8xf32>
    %80 = vector.shape_cast %79 : vector<1x8xf32> to vector<1x8x1xf32>
    %81 = tpu.reciprocal %80 : vector<1x8x1xf32> -> vector<1x8x1xf32>
    %82 = vector.broadcast %81 : vector<1x8x1xf32> to vector<1x8x8xf32>
    %83 = arith.mulf %78, %82 : vector<1x8x8xf32>
    "tpu.trace_start"() <{level = 10 : i32, message = "bqk,bkd->bqd"}> : () -> ()
    %cst_37 = arith.constant dense<0.000000e+00> : vector<1x8x8xf32>
    %84 = tpu.matmul %83, %72, %cst_37 {dimension_numbers = #tpu.dot_dimension_numbers<[2], [1], [1], [2], [0, 0, 0, 1, 1, 2], [0], [0]>} : vector<1x8x8xf32>, vector<1x8x8xf32>, vector<1x8x8xf32> -> vector<1x8x8xf32>
    "tpu.trace_stop"() : () -> ()
    %85 = vector.shape_cast %84 : vector<1x8x8xf32> to vector<8x8xf32>
    %c0_38 = arith.constant 0 : index
    %c16 = arith.constant 16 : index
    %86 = vector.load %arg35[%c0_38, %c16] : memref<8x32xf32, #tpu.memory_space<vmem>>, vector<8x8xf32>
    tpu.vector_store %arg35[%c0_38, %c16], %85 {strides = array<i32>} : memref<8x32xf32, #tpu.memory_space<vmem>>, vector<8x8xf32>,
    %87 = vector.extract_strided_slice %12 {offsets = [0, 24], sizes = [8, 8], strides = [1, 1]} : vector<8x32xf32> to vector<8x8xf32>
    %88 = vector.shape_cast %87 : vector<8x8xf32> to vector<1x8x8xf32>
    %89 = vector.extract_strided_slice %19 {offsets = [0, 24], sizes = [8, 8], strides = [1, 1]} : vector<8x32xf32> to vector<8x8xf32>
    %90 = vector.shape_cast %89 : vector<8x8xf32> to vector<1x8x8xf32>
    %91 = vector.extract_strided_slice %26 {offsets = [0, 24], sizes = [8, 8], strides = [1, 1]} : vector<8x32xf32> to vector<8x8xf32>
    %92 = vector.shape_cast %91 : vector<8x8xf32> to vector<1x8x8xf32>
    "tpu.trace_start"() <{level = 10 : i32, message = "bqd,bkd->bqk"}> : () -> ()
    %cst_39 = arith.constant dense<0.000000e+00> : vector<1x8x8xf32>
    %93 = tpu.matmul %88, %90, %cst_39 {dimension_numbers = #tpu.dot_dimension_numbers<[2], [2], [1], [1], [0, 0, 0, 1, 1, 1], [0], [0]>} : vector<1x8x8xf32>, vector<1x8x8xf32>, vector<1x8x8xf32> -> vector<1x8x8xf32>
    "tpu.trace_stop"() : () -> ()
    %cst_40 = arith.constant dense<0xFF800000> : vector<1x8xf32>
    %94 = vector.multi_reduction <maximumf>, %93, %cst_40 [2] : vector<1x8x8xf32> to vector<1x8xf32>
    %95 = vector.shape_cast %94 : vector<1x8xf32> to vector<1x8x1xf32>
    %96 = vector.broadcast %95 : vector<1x8x1xf32> to vector<1x8x8xf32>
    %97 = arith.subf %93, %96 : vector<1x8x8xf32>
    %98 = math.exp %97 : vector<1x8x8xf32>
    %cst_41 = arith.constant dense<0.000000e+00> : vector<1x8xf32>
    %99 = vector.multi_reduction <add>, %98, %cst_41 [2] : vector<1x8x8xf32> to vector<1x8xf32>
    %100 = vector.shape_cast %99 : vector<1x8xf32> to vector<1x8x1xf32>
    %101 = tpu.reciprocal %100 : vector<1x8x1xf32> -> vector<1x8x1xf32>
    %102 = vector.broadcast %101 : vector<1x8x1xf32> to vector<1x8x8xf32>
    %103 = arith.mulf %98, %102 : vector<1x8x8xf32>
    "tpu.trace_start"() <{level = 10 : i32, message = "bqk,bkd->bqd"}> : () -> ()
    %cst_42 = arith.constant dense<0.000000e+00> : vector<1x8x8xf32>
    %104 = tpu.matmul %103, %92, %cst_42 {dimension_numbers = #tpu.dot_dimension_numbers<[2], [1], [1], [2], [0, 0, 0, 1, 1, 2], [0], [0]>} : vector<1x8x8xf32>, vector<1x8x8xf32>, vector<1x8x8xf32> -> vector<1x8x8xf32>
    "tpu.trace_stop"() : () -> ()
    %105 = vector.shape_cast %104 : vector<1x8x8xf32> to vector<8x8xf32>
    %c0_43 = arith.constant 0 : index
    %c24 = arith.constant 24 : index
    %106 = vector.load %arg35[%c0_43, %c24] : memref<8x32xf32, #tpu.memory_space<vmem>>, vector<8x8xf32>
    tpu.vector_store %arg35[%c0_43, %c24], %105 {strides = array<i32>} : memref<8x32xf32, #tpu.memory_space<vmem>>, vector<8x8xf32>,
    %c0_44 = arith.constant 0 : index
    %c0_45 = arith.constant 0 : index
    %107 = vector.load %arg35[%c0_44, %c0_45] : memref<8x32xf32, #tpu.memory_space<vmem>>, vector<8x32xf32>
    %c0_46 = arith.constant 0 : index
    %c0_47 = arith.constant 0 : index
    %c0_48 = arith.constant 0 : index
    %108 = vector.load %arg13[%c0_46, %c0_47, %c0_48] : memref<1x32x32xf32, #tpu.memory_space<vmem>>, vector<1x32x32xf32>
    %109 = vector.shape_cast %108 : vector<1x32x32xf32> to vector<32x32xf32>
    %cst_49 = arith.constant dense<0.000000e+00> : vector<8x32xf32>
    %110 = tpu.matmul %107, %109, %cst_49 {dimension_numbers = #tpu.dot_dimension_numbers<[1], [0], [0], [1], [0, 0, 1, 1], [], []>} : vector<8x32xf32>, vector<32x32xf32>, vector<8x32xf32> -> vector<8x32xf32>
    %c0_50 = arith.constant 0 : index
    %c0_51 = arith.constant 0 : index
    %c0_52 = arith.constant 0 : index
    %111 = vector.load %arg14[%c0_50, %c0_51, %c0_52] : memref<1x1x32xf32, #tpu.memory_space<vmem>>, vector<1x1x32xf32>
    %112 = vector.shape_cast %111 : vector<1x1x32xf32> to vector<1x32xf32>
    %113 = vector.broadcast %112 : vector<1x32xf32> to vector<8x32xf32>
    %114 = arith.addf %110, %113 : vector<8x32xf32>
    %115 = arith.addf %3, %114 : vector<8x32xf32>
    %c0_53 = arith.constant 0 : index
    %c0_54 = arith.constant 0 : index
    %c0_55 = arith.constant 0 : index
    %116 = vector.load %arg15[%c0_53, %c0_54, %c0_55] : memref<1x1x32xf32, #tpu.memory_space<vmem>>, vector<1x1x32xf32>
    %117 = vector.shape_cast %116 : vector<1x1x32xf32> to vector<1x32xf32>
    %c0_56 = arith.constant 0 : index
    %c0_57 = arith.constant 0 : index
    %c0_58 = arith.constant 0 : index
    %118 = vector.load %arg16[%c0_56, %c0_57, %c0_58] : memref<1x1x32xf32, #tpu.memory_space<vmem>>, vector<1x1x32xf32>
    %119 = vector.shape_cast %118 : vector<1x1x32xf32> to vector<1x32xf32>
    %cst_59 = arith.constant dense<0.000000e+00> : vector<8xf32>
    %120 = vector.multi_reduction <add>, %115, %cst_59 [1] : vector<8x32xf32> to vector<8xf32>
    %121 = vector.shape_cast %120 : vector<8xf32> to vector<8x1xf32>
    %cst_60 = arith.constant 3.200000e+01 : f32
    %122 = vector.broadcast %cst_60 : f32 to vector<8x1xf32>
    %123 = arith.divf %121, %122 : vector<8x1xf32>
    %124 = vector.broadcast %123 : vector<8x1xf32> to vector<8x32xf32>
    %125 = arith.subf %115, %124 : vector<8x32xf32>
    %126 = arith.mulf %125, %125 : vector<8x32xf32>
    %cst_61 = arith.constant dense<0.000000e+00> : vector<8xf32>
    %127 = vector.multi_reduction <add>, %126, %cst_61 [1] : vector<8x32xf32> to vector<8xf32>
    %128 = vector.shape_cast %127 : vector<8xf32> to vector<8x1xf32>
    %cst_62 = arith.constant 3.200000e+01 : f32
    %129 = vector.broadcast %cst_62 : f32 to vector<8x1xf32>
    %130 = arith.divf %128, %129 : vector<8x1xf32>
    %cst_63 = arith.constant 9.99999974E-6 : f32
    %131 = vector.broadcast %cst_63 : f32 to vector<8x1xf32>
    %132 = arith.addf %130, %131 : vector<8x1xf32>
    %133 = math.rsqrt %132 : vector<8x1xf32>
    %134 = vector.broadcast %133 : vector<8x1xf32> to vector<8x32xf32>
    %135 = arith.mulf %125, %134 : vector<8x32xf32>
    %136 = vector.broadcast %117 : vector<1x32xf32> to vector<8x32xf32>
    %137 = arith.mulf %135, %136 : vector<8x32xf32>
    %138 = vector.broadcast %119 : vector<1x32xf32> to vector<8x32xf32>
    %139 = arith.addf %137, %138 : vector<8x32xf32>
    %c0_64 = arith.constant 0 : index
    %c0_65 = arith.constant 0 : index
    %c0_66 = arith.constant 0 : index
    %140 = vector.load %arg17[%c0_64, %c0_65, %c0_66] : memref<1x32x64xf32, #tpu.memory_space<vmem>>, vector<1x32x64xf32>
    %141 = vector.shape_cast %140 : vector<1x32x64xf32> to vector<32x64xf32>
    %cst_67 = arith.constant dense<0.000000e+00> : vector<8x64xf32>
    %142 = tpu.matmul %139, %141, %cst_67 {dimension_numbers = #tpu.dot_dimension_numbers<[1], [0], [0], [1], [0, 0, 1, 1], [], []>} : vector<8x32xf32>, vector<32x64xf32>, vector<8x64xf32> -> vector<8x64xf32>
    %c0_68 = arith.constant 0 : index
    %c0_69 = arith.constant 0 : index
    %c0_70 = arith.constant 0 : index
    %143 = vector.load %arg18[%c0_68, %c0_69, %c0_70] : memref<1x1x64xf32, #tpu.memory_space<vmem>>, vector<1x1x64xf32>
    %144 = vector.shape_cast %143 : vector<1x1x64xf32> to vector<1x64xf32>
    %145 = vector.broadcast %144 : vector<1x64xf32> to vector<8x64xf32>
    %146 = arith.addf %142, %145 : vector<8x64xf32>
    %cst_71 = arith.constant 0.000000e+00 : f32
    %147 = vector.broadcast %cst_71 : f32 to vector<8x64xf32>
    %148 = arith.maximumf %146, %147 : vector<8x64xf32>
    %c0_72 = arith.constant 0 : index
    %c0_73 = arith.constant 0 : index
    %c0_74 = arith.constant 0 : index
    %149 = vector.load %arg19[%c0_72, %c0_73, %c0_74] : memref<1x64x32xf32, #tpu.memory_space<vmem>>, vector<1x64x32xf32>
    %150 = vector.shape_cast %149 : vector<1x64x32xf32> to vector<64x32xf32>
    %cst_75 = arith.constant dense<0.000000e+00> : vector<8x32xf32>
    %151 = tpu.matmul %148, %150, %cst_75 {dimension_numbers = #tpu.dot_dimension_numbers<[1], [0], [0], [1], [0, 0, 1, 1], [], []>} : vector<8x64xf32>, vector<64x32xf32>, vector<8x32xf32> -> vector<8x32xf32>
    %c0_76 = arith.constant 0 : index
    %c0_77 = arith.constant 0 : index
    %c0_78 = arith.constant 0 : index
    %152 = vector.load %arg20[%c0_76, %c0_77, %c0_78] : memref<1x1x32xf32, #tpu.memory_space<vmem>>, vector<1x1x32xf32>
    %153 = vector.shape_cast %152 : vector<1x1x32xf32> to vector<1x32xf32>
    %154 = vector.broadcast %153 : vector<1x32xf32> to vector<8x32xf32>
    %155 = arith.addf %151, %154 : vector<8x32xf32>
    %156 = arith.addf %139, %155 : vector<8x32xf32>
    %c0_79 = arith.constant 0 : index
    %c0_80 = arith.constant 0 : index
    %c0_81 = arith.constant 0 : index
    %157 = vector.load %arg21[%c0_79, %c0_80, %c0_81] : memref<1x1x32xf32, #tpu.memory_space<vmem>>, vector<1x1x32xf32>
    %158 = vector.shape_cast %157 : vector<1x1x32xf32> to vector<1x32xf32>
    %c0_82 = arith.constant 0 : index
    %c0_83 = arith.constant 0 : index
    %c0_84 = arith.constant 0 : index
    %159 = vector.load %arg22[%c0_82, %c0_83, %c0_84] : memref<1x1x32xf32, #tpu.memory_space<vmem>>, vector<1x1x32xf32>
    %160 = vector.shape_cast %159 : vector<1x1x32xf32> to vector<1x32xf32>
    %cst_85 = arith.constant dense<0.000000e+00> : vector<8xf32>
    %161 = vector.multi_reduction <add>, %156, %cst_85 [1] : vector<8x32xf32> to vector<8xf32>
    %162 = vector.shape_cast %161 : vector<8xf32> to vector<8x1xf32>
    %cst_86 = arith.constant 3.200000e+01 : f32
    %163 = vector.broadcast %cst_86 : f32 to vector<8x1xf32>
    %164 = arith.divf %162, %163 : vector<8x1xf32>
    %165 = vector.broadcast %164 : vector<8x1xf32> to vector<8x32xf32>
    %166 = arith.subf %156, %165 : vector<8x32xf32>
    %167 = arith.mulf %166, %166 : vector<8x32xf32>
    %cst_87 = arith.constant dense<0.000000e+00> : vector<8xf32>
    %168 = vector.multi_reduction <add>, %167, %cst_87 [1] : vector<8x32xf32> to vector<8xf32>
    %169 = vector.shape_cast %168 : vector<8xf32> to vector<8x1xf32>
    %cst_88 = arith.constant 3.200000e+01 : f32
    %170 = vector.broadcast %cst_88 : f32 to vector<8x1xf32>
    %171 = arith.divf %169, %170 : vector<8x1xf32>
    %cst_89 = arith.constant 9.99999974E-6 : f32
    %172 = vector.broadcast %cst_89 : f32 to vector<8x1xf32>
    %173 = arith.addf %171, %172 : vector<8x1xf32>
    %174 = math.rsqrt %173 : vector<8x1xf32>
    %175 = vector.broadcast %174 : vector<8x1xf32> to vector<8x32xf32>
    %176 = arith.mulf %166, %175 : vector<8x32xf32>
    %177 = vector.broadcast %158 : vector<1x32xf32> to vector<8x32xf32>
    %178 = arith.mulf %176, %177 : vector<8x32xf32>
    %179 = vector.broadcast %160 : vector<1x32xf32> to vector<8x32xf32>
    %180 = arith.addf %178, %179 : vector<8x32xf32>
    %c0_90 = arith.constant 0 : index
    %c0_91 = arith.constant 0 : index
    %181 = vector.load %arg34[%c0_90, %c0_91] : memref<8x32xf32, #tpu.memory_space<vmem>>, vector<8x32xf32>
    tpu.vector_store %arg34[%c0_90, %c0_91], %180 {strides = array<i32>} : memref<8x32xf32, #tpu.memory_space<vmem>>, vector<8x32xf32>,
    %c1_i32 = arith.constant 1 : i32
    %182 = arith.cmpi eq, %arg1, %c1_i32 : i32
    %183 = arith.extui %182 : i1 to i32
    %c0_i32_92 = arith.constant 0 : i32
    %184 = arith.cmpi ne, %183, %c0_i32_92 : i32
    scf.if %184 {
      %185 = vector.shape_cast %180 : vector<8x32xf32> to vector<1x8x32xf32>
      %cst_93 = arith.constant dense<0.000000e+00> : vector<1x32xf32>
      %186 = vector.multi_reduction <add>, %185, %cst_93 [1] : vector<1x8x32xf32> to vector<1x32xf32>
      %cst_94 = arith.constant 8.000000e+00 : f32
      %187 = vector.broadcast %cst_94 : f32 to vector<1x32xf32>
      %188 = arith.divf %186, %187 : vector<1x32xf32>
      %c0_95 = arith.constant 0 : index
      %c0_96 = arith.constant 0 : index
      %c0_97 = arith.constant 0 : index
      %189 = vector.load %arg4[%c0_95, %c0_96, %c0_97] : memref<1x1x8xf32, #tpu.memory_space<vmem>>, vector<1x1x8xf32>
      %190 = vector.shape_cast %189 : vector<1x1x8xf32> to vector<1x8xf32>
      %c0_98 = arith.constant 0 : index
      %c0_99 = arith.constant 0 : index
      %191 = vector.load %arg23[%c0_98, %c0_99] : memref<32x20xf32, #tpu.memory_space<vmem>>, vector<32x20xf32>
      %cst_100 = arith.constant dense<0.000000e+00> : vector<1x20xf32>
      %192 = tpu.matmul %188, %191, %cst_100 {dimension_numbers = #tpu.dot_dimension_numbers<[1], [0], [0], [1], [0, 0, 1, 1], [], []>} : vector<1x32xf32>, vector<32x20xf32>, vector<1x20xf32> -> vector<1x20xf32>
      %c0_101 = arith.constant 0 : index
      %c0_102 = arith.constant 0 : index
      %193 = vector.load %arg24[%c0_101, %c0_102] : memref<8x20xf32, #tpu.memory_space<vmem>>, vector<8x20xf32>
      %cst_103 = arith.constant dense<0.000000e+00> : vector<1x20xf32>
      %194 = tpu.matmul %190, %193, %cst_103 {dimension_numbers = #tpu.dot_dimension_numbers<[1], [0], [0], [1], [0, 0, 1, 1], [], []>} : vector<1x8xf32>, vector<8x20xf32>, vector<1x20xf32> -> vector<1x20xf32>
      %195 = arith.addf %192, %194 : vector<1x20xf32>
      %c0_104 = arith.constant 0 : index
      %c0_105 = arith.constant 0 : index
      %196 = vector.load %arg25[%c0_104, %c0_105] : memref<1x20xf32, #tpu.memory_space<vmem>>, vector<1x20xf32>
      %197 = arith.addf %195, %196 : vector<1x20xf32>
      %cst_106 = arith.constant 0.000000e+00 : f32
      %198 = vector.broadcast %cst_106 : f32 to vector<1x20xf32>
      %199 = arith.maximumf %197, %198 : vector<1x20xf32>
      %c0_107 = arith.constant 0 : index
      %c0_108 = arith.constant 0 : index
      %200 = vector.load %arg26[%c0_107, %c0_108] : memref<20x8xf32, #tpu.memory_space<vmem>>, vector<20x8xf32>
      %cst_109 = arith.constant dense<0.000000e+00> : vector<1x8xf32>
      %201 = tpu.matmul %199, %200, %cst_109 {dimension_numbers = #tpu.dot_dimension_numbers<[1], [0], [0], [1], [0, 0, 1, 1], [], []>} : vector<1x20xf32>, vector<20x8xf32>, vector<1x8xf32> -> vector<1x8xf32>
      %c0_110 = arith.constant 0 : index
      %c0_111 = arith.constant 0 : index
      %202 = vector.load %arg27[%c0_110, %c0_111] : memref<1x8xf32, #tpu.memory_space<vmem>>, vector<1x8xf32>
      %203 = arith.addf %201, %202 : vector<1x8xf32>
      %c0_112 = arith.constant 0 : index
      %c0_113 = arith.constant 0 : index
      %204 = vector.load %arg28[%c0_112, %c0_113] : memref<32x20xf32, #tpu.memory_space<vmem>>, vector<32x20xf32>
      %cst_114 = arith.constant dense<0.000000e+00> : vector<1x20xf32>
      %205 = tpu.matmul %188, %204, %cst_114 {dimension_numbers = #tpu.dot_dimension_numbers<[1], [0], [0], [1], [0, 0, 1, 1], [], []>} : vector<1x32xf32>, vector<32x20xf32>, vector<1x20xf32> -> vector<1x20xf32>
      %c0_115 = arith.constant 0 : index
      %c0_116 = arith.constant 0 : index
      %206 = vector.load %arg29[%c0_115, %c0_116] : memref<8x20xf32, #tpu.memory_space<vmem>>, vector<8x20xf32>
      %cst_117 = arith.constant dense<0.000000e+00> : vector<1x20xf32>
      %207 = tpu.matmul %190, %206, %cst_117 {dimension_numbers = #tpu.dot_dimension_numbers<[1], [0], [0], [1], [0, 0, 1, 1], [], []>} : vector<1x8xf32>, vector<8x20xf32>, vector<1x20xf32> -> vector<1x20xf32>
      %208 = arith.addf %205, %207 : vector<1x20xf32>
      %c0_118 = arith.constant 0 : index
      %c0_119 = arith.constant 0 : index
      %209 = vector.load %arg30[%c0_118, %c0_119] : memref<1x20xf32, #tpu.memory_space<vmem>>, vector<1x20xf32>
      %210 = arith.addf %208, %209 : vector<1x20xf32>
      %cst_120 = arith.constant 0.000000e+00 : f32
      %211 = vector.broadcast %cst_120 : f32 to vector<1x20xf32>
      %212 = arith.maximumf %210, %211 : vector<1x20xf32>
      %c0_121 = arith.constant 0 : index
      %c0_122 = arith.constant 0 : index
      %213 = vector.load %arg31[%c0_121, %c0_122] : memref<20x24xf32, #tpu.memory_space<vmem>>, vector<20x24xf32>
      %cst_123 = arith.constant dense<0.000000e+00> : vector<1x24xf32>
      %214 = tpu.matmul %212, %213, %cst_123 {dimension_numbers = #tpu.dot_dimension_numbers<[1], [0], [0], [1], [0, 0, 1, 1], [], []>} : vector<1x20xf32>, vector<20x24xf32>, vector<1x24xf32> -> vector<1x24xf32>
      %c0_124 = arith.constant 0 : index
      %c0_125 = arith.constant 0 : index
      %215 = vector.load %arg32[%c0_124, %c0_125] : memref<1x24xf32, #tpu.memory_space<vmem>>, vector<1x24xf32>
      %216 = arith.addf %214, %215 : vector<1x24xf32>
      %217 = tpu.concatenate %203, %216 in 1 : vector<1x8xf32>, vector<1x24xf32> -> vector<1x32xf32>
      %218 = vector.shape_cast %217 : vector<1x32xf32> to vector<1x1x32xf32>
      %c0_126 = arith.constant 0 : index
      %c0_127 = arith.constant 0 : index
      %c0_128 = arith.constant 0 : index
      %219 = vector.load %arg33[%c0_126, %c0_127, %c0_128] : memref<1x1x32xf32, #tpu.memory_space<vmem>>, vector<1x1x32xf32>
      tpu.vector_store %arg33[%c0_126, %c0_127, %c0_128], %218 {strides = array<i32>} : memref<1x1x32xf32, #tpu.memory_space<vmem>>, vector<1x1x32xf32>,
    } else {
    }
    return
  }
  func.func @transform_0(%arg0: i32, %arg1: i32) -> (i32, i32, i32) {
    %c0_i32 = arith.constant 0 : i32
    %c0_i32_0 = arith.constant 0 : i32
    %c0_i32_1 = arith.constant 0 : i32
    return %arg0, %c0_i32, %c0_i32_0 : i32, i32, i32
  }
  func.func @transform_1(%arg0: i32, %arg1: i32) -> (i32, i32) {
    %c0_i32 = arith.constant 0 : i32
    %c0_i32_0 = arith.constant 0 : i32
    %c0_i32_1 = arith.constant 0 : i32
    return %c0_i32, %c0_i32_0 : i32, i32
  }
  func.func @transform_2(%arg0: i32, %arg1: i32) -> (i32, i32, i32) {
    %c0_i32 = arith.constant 0 : i32
    %c0_i32_0 = arith.constant 0 : i32
    %c0_i32_1 = arith.constant 0 : i32
    return %arg0, %c0_i32, %c0_i32_0 : i32, i32, i32
  }
  func.func @transform_3(%arg0: i32, %arg1: i32) -> (i32, i32) {
    %c0_i32 = arith.constant 0 : i32
    %c0_i32_0 = arith.constant 0 : i32
    %c0_i32_1 = arith.constant 0 : i32
    return %c0_i32, %c0_i32_0 : i32, i32
  }
  func.func @transform_4(%arg0: i32, %arg1: i32) -> (i32, i32) {
    %c0_i32 = arith.constant 0 : i32
    %c0_i32_0 = arith.constant 0 : i32
    %c0_i32_1 = arith.constant 0 : i32
    return %c0_i32, %c0_i32_0 : i32, i32
  }
  func.func @transform_5(%arg0: i32, %arg1: i32) -> (i32, i32, i32) {
    %c0_i32 = arith.constant 0 : i32
    %c0_i32_0 = arith.constant 0 : i32
    %c0_i32_1 = arith.constant 0 : i32
    return %arg1, %c0_i32, %c0_i32_0 : i32, i32, i32
  }
  func.func @transform_6(%arg0: i32, %arg1: i32) -> (i32, i32, i32) {
    %c0_i32 = arith.constant 0 : i32
    %c0_i32_0 = arith.constant 0 : i32
    %c0_i32_1 = arith.constant 0 : i32
    return %arg1, %c0_i32, %c0_i32_0 : i32, i32, i32
  }
  func.func @transform_7(%arg0: i32, %arg1: i32) -> (i32, i32, i32) {
    %c0_i32 = arith.constant 0 : i32
    %c0_i32_0 = arith.constant 0 : i32
    %c0_i32_1 = arith.constant 0 : i32
    return %arg1, %c0_i32, %c0_i32_0 : i32, i32, i32
  }
  func.func @transform_8(%arg0: i32, %arg1: i32) -> (i32, i32, i32) {
    %c0_i32 = arith.constant 0 : i32
    %c0_i32_0 = arith.constant 0 : i32
    %c0_i32_1 = arith.constant 0 : i32
    return %arg1, %c0_i32, %c0_i32_0 : i32, i32, i32
  }
  func.func @transform_9(%arg0: i32, %arg1: i32) -> (i32, i32, i32) {
    %c0_i32 = arith.constant 0 : i32
    %c0_i32_0 = arith.constant 0 : i32
    %c0_i32_1 = arith.constant 0 : i32
    return %arg1, %c0_i32, %c0_i32_0 : i32, i32, i32
  }
  func.func @transform_10(%arg0: i32, %arg1: i32) -> (i32, i32, i32) {
    %c0_i32 = arith.constant 0 : i32
    %c0_i32_0 = arith.constant 0 : i32
    %c0_i32_1 = arith.constant 0 : i32
    return %arg1, %c0_i32, %c0_i32_0 : i32, i32, i32
  }
  func.func @transform_11(%arg0: i32, %arg1: i32) -> (i32, i32, i32) {
    %c0_i32 = arith.constant 0 : i32
    %c0_i32_0 = arith.constant 0 : i32
    %c0_i32_1 = arith.constant 0 : i32
    return %arg1, %c0_i32, %c0_i32_0 : i32, i32, i32
  }
  func.func @transform_12(%arg0: i32, %arg1: i32) -> (i32, i32, i32) {
    %c0_i32 = arith.constant 0 : i32
    %c0_i32_0 = arith.constant 0 : i32
    %c0_i32_1 = arith.constant 0 : i32
    return %arg1, %c0_i32, %c0_i32_0 : i32, i32, i32
  }
  func.func @transform_13(%arg0: i32, %arg1: i32) -> (i32, i32, i32) {
    %c0_i32 = arith.constant 0 : i32
    %c0_i32_0 = arith.constant 0 : i32
    %c0_i32_1 = arith.constant 0 : i32
    return %arg1, %c0_i32, %c0_i32_0 : i32, i32, i32
  }
  func.func @transform_14(%arg0: i32, %arg1: i32) -> (i32, i32, i32) {
    %c0_i32 = arith.constant 0 : i32
    %c0_i32_0 = arith.constant 0 : i32
    %c0_i32_1 = arith.constant 0 : i32
    return %arg1, %c0_i32, %c0_i32_0 : i32, i32, i32
  }
  func.func @transform_15(%arg0: i32, %arg1: i32) -> (i32, i32, i32) {
    %c0_i32 = arith.constant 0 : i32
    %c0_i32_0 = arith.constant 0 : i32
    %c0_i32_1 = arith.constant 0 : i32
    return %arg1, %c0_i32, %c0_i32_0 : i32, i32, i32
  }
  func.func @transform_16(%arg0: i32, %arg1: i32) -> (i32, i32, i32) {
    %c0_i32 = arith.constant 0 : i32
    %c0_i32_0 = arith.constant 0 : i32
    %c0_i32_1 = arith.constant 0 : i32
    return %arg1, %c0_i32, %c0_i32_0 : i32, i32, i32
  }
  func.func @transform_17(%arg0: i32, %arg1: i32) -> (i32, i32, i32) {
    %c0_i32 = arith.constant 0 : i32
    %c0_i32_0 = arith.constant 0 : i32
    %c0_i32_1 = arith.constant 0 : i32
    return %arg1, %c0_i32, %c0_i32_0 : i32, i32, i32
  }
  func.func @transform_18(%arg0: i32, %arg1: i32) -> (i32, i32, i32) {
    %c0_i32 = arith.constant 0 : i32
    %c0_i32_0 = arith.constant 0 : i32
    %c0_i32_1 = arith.constant 0 : i32
    return %arg1, %c0_i32, %c0_i32_0 : i32, i32, i32
  }
  func.func @transform_19(%arg0: i32, %arg1: i32) -> (i32, i32, i32) {
    %c0_i32 = arith.constant 0 : i32
    %c0_i32_0 = arith.constant 0 : i32
    %c0_i32_1 = arith.constant 0 : i32
    return %arg1, %c0_i32, %c0_i32_0 : i32, i32, i32
  }
  func.func @transform_20(%arg0: i32, %arg1: i32) -> (i32, i32, i32) {
    %c0_i32 = arith.constant 0 : i32
    %c0_i32_0 = arith.constant 0 : i32
    %c0_i32_1 = arith.constant 0 : i32
    return %arg1, %c0_i32, %c0_i32_0 : i32, i32, i32
  }
  func.func @transform_21(%arg0: i32, %arg1: i32) -> (i32, i32) {
    %c0_i32 = arith.constant 0 : i32
    %c0_i32_0 = arith.constant 0 : i32
    %c0_i32_1 = arith.constant 0 : i32
    return %c0_i32, %c0_i32_0 : i32, i32
  }
  func.func @transform_22(%arg0: i32, %arg1: i32) -> (i32, i32) {
    %c0_i32 = arith.constant 0 : i32
    %c0_i32_0 = arith.constant 0 : i32
    %c0_i32_1 = arith.constant 0 : i32
    return %c0_i32, %c0_i32_0 : i32, i32
  }
  func.func @transform_23(%arg0: i32, %arg1: i32) -> (i32, i32) {
    %c0_i32 = arith.constant 0 : i32
    %c0_i32_0 = arith.constant 0 : i32
    %c0_i32_1 = arith.constant 0 : i32
    return %c0_i32, %c0_i32_0 : i32, i32
  }
  func.func @transform_24(%arg0: i32, %arg1: i32) -> (i32, i32) {
    %c0_i32 = arith.constant 0 : i32
    %c0_i32_0 = arith.constant 0 : i32
    %c0_i32_1 = arith.constant 0 : i32
    return %c0_i32, %c0_i32_0 : i32, i32
  }
  func.func @transform_25(%arg0: i32, %arg1: i32) -> (i32, i32) {
    %c0_i32 = arith.constant 0 : i32
    %c0_i32_0 = arith.constant 0 : i32
    %c0_i32_1 = arith.constant 0 : i32
    return %c0_i32, %c0_i32_0 : i32, i32
  }
  func.func @transform_26(%arg0: i32, %arg1: i32) -> (i32, i32) {
    %c0_i32 = arith.constant 0 : i32
    %c0_i32_0 = arith.constant 0 : i32
    %c0_i32_1 = arith.constant 0 : i32
    return %c0_i32, %c0_i32_0 : i32, i32
  }
  func.func @transform_27(%arg0: i32, %arg1: i32) -> (i32, i32) {
    %c0_i32 = arith.constant 0 : i32
    %c0_i32_0 = arith.constant 0 : i32
    %c0_i32_1 = arith.constant 0 : i32
    return %c0_i32, %c0_i32_0 : i32, i32
  }
  func.func @transform_28(%arg0: i32, %arg1: i32) -> (i32, i32) {
    %c0_i32 = arith.constant 0 : i32
    %c0_i32_0 = arith.constant 0 : i32
    %c0_i32_1 = arith.constant 0 : i32
    return %c0_i32, %c0_i32_0 : i32, i32
  }
  func.func @transform_29(%arg0: i32, %arg1: i32) -> (i32, i32) {
    %c0_i32 = arith.constant 0 : i32
    %c0_i32_0 = arith.constant 0 : i32
    %c0_i32_1 = arith.constant 0 : i32
    return %c0_i32, %c0_i32_0 : i32, i32
  }
  func.func @transform_30(%arg0: i32, %arg1: i32) -> (i32, i32) {
    %c0_i32 = arith.constant 0 : i32
    %c0_i32_0 = arith.constant 0 : i32
    %c0_i32_1 = arith.constant 0 : i32
    return %c0_i32, %c0_i32_0 : i32, i32
  }
  func.func @transform_31(%arg0: i32, %arg1: i32) -> (i32, i32, i32) {
    %c0_i32 = arith.constant 0 : i32
    %c0_i32_0 = arith.constant 0 : i32
    %c0_i32_1 = arith.constant 0 : i32
    return %arg0, %c0_i32, %c0_i32_0 : i32, i32, i32
  }
}

</mosaic_0001>

<bundles_post_ra>
// kernel: tpu_custom_call.1
= control target key start
LH: loop header
LB: loop body
LE: loop exit
PB: predicated region body
PF: predicated region fallthrough
CT: control target
= control target key end

     0   :  { %s5043_s6 = smov 1   ;;  %s5044_s10 = smov 2   ;;  %s6039_s0 = inlined_call_operand.smem [shape: u32[32], index: -1, kind: input, shape index: {}] }
   0x1   :  { %s5114_s5 = sld [smem:[%s6039_s0]]   ;;  %s5045_s14 = smov 3  }
   0x2   :  { %s5119_s9 = sld [smem:[%s6039_s0 + %s5043_s6]]   ;;  %s5046_s18 = smov 4  }
   0x3   :  { %s5124_s13 = sld [smem:[%s6039_s0 + %s5044_s10]]   ;;  %s5047_s22 = smov 5  }
   0x4   :  { %s5129_s17 = sld [smem:[%s6039_s0 + %s5045_s14]]   ;;  %s5048_s26 = smov 6  }
   0x5   :  { %s5134_s21 = sld [smem:[%s6039_s0 + %s5046_s18]]   ;;  %s5049_s30 = smov 7  }
   0x6   :  { %s5139_s25 = sld [smem:[%s6039_s0 + %s5047_s22]]   ;;  %s5050_s4 = smov 8  }
   0x7   :  { %6081 = sst [smem:[#allocation38_spill]] %s5114_s5  ;;  %s5051_s10 = smov 9  }
   0x8   :  { %6082 = sst [smem:[#allocation39_spill]] %s5119_s9  ;;  %s5052_s15 = smov 10  }
   0x9   :  { %6083 = sst [smem:[#allocation40_spill]] %s5124_s13  ;;  %s5053_s20 = smov 11  }
   0xa   :  { %6084 = sst [smem:[#allocation41_spill]] %s5129_s17  ;;  %s5055_s1 = smov 13  }
   0xb   :  { %6085 = sst [smem:[#allocation42_spill]] %s5134_s21  ;;  %s5056_s7 = smov 14  }
   0xc   :  { %6086 = sst [smem:[#allocation43_spill]] %s5139_s25  ;;  %s5058_s22 = smov 16  }
   0xd   :  { %s5144_s29 = sld [smem:[%s6039_s0 + %s5048_s26]]   ;;  %s5054_s26 = smov 12  }
   0xe   :  { %s5149_s3 = sld [smem:[%s6039_s0 + %s5049_s30]]   ;;  %s5059_s28 = smov 17  }
   0xf   :  { %s5154_s8 = sld [smem:[%s6039_s0 + %s5050_s4]]  }
  0x10   :  { %s5159_s14 = sld [smem:[%s6039_s0 + %s5051_s10]]  }
  0x11   :  { %s5164_s19 = sld [smem:[%s6039_s0 + %s5052_s15]]   ;;  %s5057_s15 = smov 15  }
  0x12   :  { %s5169_s24 = sld [smem:[%s6039_s0 + %s5053_s20]]  }
  0x13   :  { %s5174_s30 = sld [smem:[%s6039_s0 + %s5054_s26]]  }
  0x14   :  { %6087 = sst [smem:[#allocation44_spill]] %s5149_s3 }
  0x15   :  { %6088 = sst [smem:[#allocation45_spill]] %s5154_s8 }
  0x16   :  { %6089 = sst [smem:[#allocation46_spill]] %s5159_s14 }
  0x17   :  { %s5179_s6 = sld [smem:[%s6039_s0 + %s5055_s1]]  }
  0x18   :  { %6090 = sst [smem:[#allocation47_spill]] %s5169_s24 }
  0x19   :  { %s5184_s12 = sld [smem:[%s6039_s0 + %s5056_s7]]   ;;  %s5060_s7 = smov 18  }
  0x1a   :  { %s5189_s20 = sld [smem:[%s6039_s0 + %s5057_s15]]   ;;  %s5061_s15 = smov 19  }
  0x1b   :  { %s5194_s27 = sld [smem:[%s6039_s0 + %s5058_s22]]   ;;  %s5062_s22 = smov 20  }
  0x1c   :  { %s5199_s4 = sld [smem:[%s6039_s0 + %s5059_s28]]   ;;  %s5063_s28 = smov 21  }
  0x1d   :  { %6091 = sst [smem:[#allocation48_spill]] %s5179_s6 }
  0x1e   :  { %s5204_s24 = sld [smem:[%s6039_s0 + %s5060_s7]]   ;;  %s5064_s7 = smov 22  }
  0x1f   :  { %6092 = sst [smem:[#allocation49_spill]] %s5184_s12 }
  0x20   :  { %6093 = sst [smem:[#allocation50_spill]] %s5189_s20 }
  0x21   :  { %s5209_s20 = sld [smem:[%s6039_s0 + %s5061_s15]]   ;;  %s5065_s15 = smov 23  }
  0x22   :  { %6094 = sst [smem:[#allocation51_spill]] %s5199_s4 }
  0x23   :  { %s5214_s14 = sld [smem:[%s6039_s0 + %s5062_s22]]   ;;  %s5066_s22 = smov 24  }
  0x24   :  { %s5219_s4 = sld [smem:[%s6039_s0 + %s5063_s28]]   ;;  %s5067_s28 = smov 25  }
  0x25   :  { %s5224_s3 = sld [smem:[%s6039_s0 + %s5064_s7]]   ;;  %s5068_s7 = smov 26  }
  0x26   :  { %s5229_s25 = sld [smem:[%s6039_s0 + %s5065_s15]]   ;;  %s5069_s15 = smov 27  }
  0x27   :  { %6095 = sst [smem:[#allocation52_spill]] %s5209_s20 }
  0x29   :  { %6096 = sst [smem:[#allocation53_spill]] %s5214_s14 }
  0x2a   :  { %6097 = sst [smem:[#allocation54_spill]] %s5219_s4 }
  0x2b   :  { %6098 = sst [smem:[#allocation55_spill]] %s5224_s3 }
  0x2c   :  { %6099 = sst [smem:[#allocation56_spill]] %s5229_s25 }
  0x2d   :  { %s5234_s14 = sld [smem:[%s6039_s0 + %s5066_s22]]   ;;  %s5070_s22 = smov 28  }
  0x2e   :  { %s5239_s4 = sld [smem:[%s6039_s0 + %s5067_s28]]   ;;  %s5071_s28 = smov 29  }
  0x2f   :  { %s5244_s3 = sld [smem:[%s6039_s0 + %s5068_s7]]   ;;  %s5072_s7 = smov 30  }
  0x30   :  { %s5249_s25 = sld [smem:[%s6039_s0 + %s5069_s15]]   ;;  %s5073_s15 = smov 31  }
  0x33   :  { %6100 = sst [smem:[#allocation57_spill]] %s5234_s14 }
  0x34   :  { %6101 = sst [smem:[#allocation58_spill]] %s5239_s4 }
  0x35   :  { %6102 = sst [smem:[#allocation59_spill]] %s5244_s3 }
  0x36   :  { %6103 = sst [smem:[#allocation60_spill]] %s5249_s25 }
  0x37   :  { %s5254_s14 = sld [smem:[%s6039_s0 + %s5070_s22]]  }
  0x38   :  { %s5259_s4 = sld [smem:[%s6039_s0 + %s5071_s28]]  }
  0x39   :  { %s5264_s3 = sld [smem:[%s6039_s0 + %s5072_s7]]  }
  0x3a   :  { %s5269_s25 = sld [smem:[%s6039_s0 + %s5073_s15]]  }
  0x3d   :  { %6104 = sst [smem:[#allocation61_spill]] %s5254_s14 }
  0x3e   :  { %6105 = sst [smem:[#allocation62_spill]] %s5259_s4 }
  0x3f   :  { %6106 = sst [smem:[#allocation63_spill]] %s5264_s3 }
  0x40   :  { %6107 = sst [smem:[#allocation64_spill]] %s5269_s25 }
  0x41   :  { %68 = vsyncpa [#allocation5], 0 }
  0x42   :  { %70 = vsyncpa [#allocation5 + $0x1], 0 }
  0x43   :  { %71 = vsyncpa [#allocation8], 0 }
  0x44   :  { %72 = vsyncpa [#allocation12], 0 }
  0x45   :  { %73 = vsyncpa [#allocation26], 0 }
  0x46   :  { %74 = vsyncpa [#allocation6], 0 }
  0x47   :  { %76 = vsyncpa [#allocation6 + $0x1], 0  ;;  %s5271_s22 = smov 0   ;;  %s5273_s23 = smov 0  }
  0x48   :  { %s5275_s26 = smov 0   ;;  %s5277_s28 = smov 0  }
  0x49   :  { %s5279_s1 = smov 0   ;;  %s5281_s2 = smov 0  }
  0x4a   :  { %s5283_s0 = smov 0   ;;  %s5285_s7 = smov 0  }
  0x4b   :  { %s5287_s10 = smov 0   ;;  %s5289_s11 = smov 0  }
  0x4c   :  { %s5291_s15 = smov 0  }
  0x4d LB: > { %s6108_s13 = sld [smem:[#allocation40_spill]]  ;;  %s5327_s16 = sadd.s32 4294967295, %s5041_s15   ;;  %s5017_s1 = sphi %s5279_s1, %s6216_s1   ;;  %s5013_s28 = sphi %s5277_s28, %s6215_s28   ;;  %s5009_s26 = sphi %s5275_s26, %s6208_s26   ;;  %s5005_s23 = sphi %s5273_s23, %s6214_s23   ;;  %s5001_s22 = sphi %s5271_s22, %s6213_s22   ;;  %s5041_s15 = sphi %s5291_s15, %s82_s15   ;;  %s5037_s11 = sphi %s5289_s11, %s6219_s11   ;;  %s5033_s10 = sphi %s5287_s10, %s6211_s10   ;;  %s5029_s7 = sphi %s5285_s7, %s6218_s7   ;;  %s5025_s0 = sphi %s5283_s0, %s6210_s0   ;;  %s5021_s2 = sphi %s5281_s2, %s6217_s2  }
  0x4e   : > { %s6109_s12 = sld [smem:[#allocation49_spill]]  ;;  %s3781_s18 = sadd.s32 4294967294, %s5041_s15  }
  0x4f   : > { %s6110_s8 = sld [smem:[#allocation45_spill]]  ;;  %s91_s25 = sadd.s32 1, %s5033_s10 }
  0x50   : > { %s6111_s6 = sld [smem:[#allocation48_spill]]  ;;  %p92_p0 = scmp.ge.s32.totalorder %s91_s25, 2 }
  0x51   : > { %s6112_s5 = sld [smem:[#allocation38_spill]]  ;;  %s101_s3 = sadd.s32 1, %s5021_s2 }
  0x52   : > { %6113 = sst [smem:[#allocation65_spill]] %s5009_s26  ;;  %p108_p1 = scmp.ne.s32.totalorder %s5021_s2, %s5017_s1 }
  0x53   : > { %6114 = sst [smem:[#allocation66_spill]] %s5013_s28  ;;  %p109_p2 = scmp.eq.s32.totalorder %s5041_s15, 0 }
  0x54   : > { %6115 = sst [smem:[#allocation67_spill]] %s5025_s0  ;;  %s6221_s25 = smov (%p92_p0, %s91_s25), 0 }
  0x55   : > { %6116 = sst [smem:[#allocation68_spill]] %s5029_s7  ;;  %s94_s7 = sadd.s32 1, %s5037_s11 }
  0x56   : > { %6117 = sst [smem:[#allocation69_spill]] %s5033_s10  ;;  %s6223_s7 = smov (!%p92_p0, %s94_s7), %s5037_s11 }
  0x57   : > { %6118 = sst [smem:[#allocation70_spill]] %s6221_s25  ;;  %p5344_p3 = por %p109_p2, %p108_p1 }
  0x58   : > { %p114_p4 = scmp.ne.s32.totalorder %s5017_s1, %s5013_s28  ;;  %p96_p5 = scmp.ge.s32.totalorder %s6223_s7, 2 }
  0x59   : > { %p6057_p6 = scmp.eq.s32.totalorder %s5327_s16, 0  ;;  %s239_s0 = ssub.s32 %s5033_s10, %s6221_s25 }
  0x5a   : > { %s242_s14 = sadd.s32 1, %s5009_s26  ;;  %s6225_s7 = smov (%p96_p5, %s6223_s7), 0 }
  0x5b   : > { %6120 = sst [smem:[#allocation71_spill]] %s6225_s7  ;;  %p5361_p7 = por %p6057_p6, %p114_p4 }
  0x5c   : > { %p240_p8 = scmp.eq.s32.totalorder %s239_s0, 0  ;;  %s98_s20 = ssub.s32 %s5037_s11, %s6225_s7 }
  0x5d   : > { %s6121_s21 = scalar_select %p5361_p7, 1, 0 }
  0x5e   : > { %p249_p9 = scmp.ne.s32.totalorder %s5009_s26, %s5005_s23  ;;  %p99_p10 = scmp.eq.s32.totalorder %s98_s20, 0 }
  0x5f   : > { %p255_p11 = scmp.ne.s32.totalorder %s5005_s23, %s5001_s22  ;;  %p853_p0 = scmp.eq.s32.totalorder %s5327_s16, 3 }
  0x60   : > { %s5372_s25 = scalar_select %p240_p8, %s5009_s26, %s242_s14  }
  0x61   : > { %s5375_s17 = scalar_select %p99_p10, %s5021_s2, %s101_s3  }
  0x62   : > { %6122 = sst [smem:[#allocation72_spill]] %s5372_s25  ;;  %p5379_p12 = por %p249_p9, %p109_p2 }
  0x63   : > { %6123 = sst [smem:[#allocation73_spill]] %s5375_s17  ;;  %p5385_p13 = por %p255_p11, %p6057_p6 }
  0x64   : > { %p859_p5 = scmp.eq.s32.totalorder %s3781_s18, 3  ;;  %p5393_p8 = por %p853_p0, %p108_p1 }
  0x65   : > { %s6125_s0 = scalar_select %p5385_p13, 1, 0 }
  0x66   : > { %s6127_s14 = scalar_select %p5393_p8, 1, 0 }
  0x67   : > { %6126 = sst [smem:[#allocation74_spill]] %s6125_s0  ;;  %p5400_p10 = por %p859_p5, %p114_p4 }
  0x68   : > { %6128 = sst [smem:[#allocation75_spill]] %s6127_s14  ;;  %p6058_p2 = scmp.lt.s32.totalorder %s5041_s15, 4 }
  0x69   : > { %s6129_s3 = scalar_select %p5400_p10, 1, 0 }
  0x6a   : > { %s966_s20 = sand.u32 1, %s5041_s15   ;;  %s6053_s22 = sand.u32 1, %s5021_s2  }
  0x6b   : > { %6130 = sst [smem:[#allocation76_spill]] %s6129_s3  ;;  %s3790_s7 = sshll.u32 %s6053_s22, 3 }
  0x6c   : > { %s3791_s17 = sshll.u32 %s5037_s11, 7  ;;  %s970_s18 = scalar_lea.vmem [#allocation4], %s3790_s7 }
  0x6d   : > { %s5411_s25 = scalar_lea.hbm %s6112_s5, %s3791_s17  ;;  %s977_s14 = sshll.u32 %s970_s18, 4  ;;  %s5421_s14 = int_to_ptr.vmem [resolvable:$true] %s977_s14 }
  0x6e   : > { %p5417_p1 = pnand %p6058_p2, %p5344_p3  ;;  %s5424_s22 = sand.u32 1, %s5009_s26  }
  0x6f   : > { %s5427_s3 = sshll.u32 %s5033_s10, 4  ;;  %s5429_s17 = scalar_lea.sflag [#allocation5], %s966_s20 }
  0x70   : > { %s4397_s0 = scalar_lea.hbm %s5411_s25, 128  ;;  %p4399_p9 = pneg %p5417_p1 }
  0x71   : > { %p4398_p4 = scmp.ne.s32.totalorder %s5411_s25, %s4397_s0  ;;  %s4402_s4 = scalar_lea.hbm %s6112_s5, 256 }
  0x72   : > { %p4403_p0 = scmp.lt.s32.totalorder %s5411_s25, %s6112_s5  ;;  %p4404_p5 = scmp.lt.s32.totalorder %s4402_s4, %s4397_s0 }
  0x73   : > { %p4400_p3 = pnand %p4399_p9, %p4398_p4 }
  0x74   : > { %p4405_p6 = por %p4404_p5, %p4403_p0 }
  0x75   : > { %p4401_p11 = pneg %p4400_p3 }
  0x77   : > { %p4406_p2 = pnand %p4405_p6, %p4401_p11 }
  0x79   : > { %4409 = shalt.err (!%p4406_p2)
}
  0x7a   : > { %s4410_s7 = scalar_lea.vmem %s5421_s14, 128  ;;  %s5074_s20 = smov [#allocation4]  }
  0x7b   : > { %p4411_p10 = scmp.ne.s32.totalorder %s5421_s14, %s4410_s7  ;;  %s4415_s18 = sshll.u32 %s5074_s20, 4  ;;  %s4416_s18 = int_to_ptr.vmem [resolvable:$false] %s4415_s18 }
  0x7c   : > { %s4417_s10 = scalar_lea.vmem %s4416_s18, 256  ;;  %p4418_p4 = scmp.lt.s32.totalorder %s5421_s14, %s4416_s18 }
  0x7d   : > { %p4413_p8 = pnand %p4411_p10, %p4399_p9  ;;  %p4419_p3 = scmp.lt.s32.totalorder %s4417_s10, %s4410_s7 }
  0x7f   : > { %p4414_p13 = pneg %p4413_p8  ;;  %p4420_p7 = por %p4419_p3, %p4418_p4 }
  0x81   : > { %p4421_p0 = pnand %p4420_p7, %p4414_p13 }
  0x83   : > { %4424 = shalt.err (!%p4421_p0)
}
  0x84   : > { %4187 = dma.hbm_to_vmem [thread:$0]  (!%p5417_p1), %s5411_s25, 128, %s5421_s14, %s5429_s17  }
  0x85   : > { %p6132_p6 = scmp.lt.s32.totalorder %s5041_s15, 4  ;;  %s3792_s0 = sshll.u32 %s5037_s11, 4 }
  0x86   : > { %s6134_s4 = sand.u32 1, %s5021_s2   ;;  %s992_s18 = scalar_lea.hbm %s6108_s13, %s3792_s0 }
  0x87   : > { %p5456_p8 = pnand %p6132_p6, %p5379_p12  ;;  %s987_s7 = scalar_lea.vmem [#allocation9], %s6134_s4 }
  0x88   : > { %s994_s20 = sshll.u32 %s987_s7, 4  ;;  %s4425_s5 = scalar_lea.hbm %s992_s18, 16  ;;  %s995_s20 = int_to_ptr.vmem [resolvable:$true] %s994_s20 }
  0x89   : > { %s6133_s10 = scalar_select %p5456_p8, 1, 0 }
  0x8a   : > { %p4426_p7 = scmp.ne.s32.totalorder %s992_s18, %s4425_s5  ;;  %s4430_s26 = scalar_lea.hbm %s6108_s13, 32 }
  0x8b   : > { %p4431_p2 = scmp.lt.s32.totalorder %s992_s18, %s6108_s13  ;;  %p4432_p11 = scmp.lt.s32.totalorder %s4430_s26, %s4425_s5 }
  0x8c   : > { %p4428_p13 = pnand %p4426_p7, %p4399_p9 }
  0x8d   : > { %p4433_p5 = por %p4432_p11, %p4431_p2 }
  0x8e   : > { %p4429_p10 = pneg %p4428_p13 }
  0x90   : > { %p4434_p12 = pnand %p4433_p5, %p4429_p10 }
  0x92   : > { %4437 = shalt.err (!%p4434_p12)
}
  0x93   : > { %s4438_s9 = scalar_lea.vmem %s995_s20, 16  ;;  %s5075_s25 = smov [#allocation9]  }
  0x94   : > { %p4439_p4 = scmp.ne.s32.totalorder %s995_s20, %s4438_s9  ;;  %s4443_s14 = sshll.u32 %s5075_s25, 4  ;;  %s4444_s14 = int_to_ptr.vmem [resolvable:$false] %s4443_s14 }
  0x95   : > { %s4445_s0 = scalar_lea.vmem %s4444_s14, 32  ;;  %p4446_p6 = scmp.lt.s32.totalorder %s995_s20, %s4444_s14 }
  0x96   : > { %p4441_p3 = pnand %p4439_p4, %p4399_p9  ;;  %p4447_p7 = scmp.lt.s32.totalorder %s4445_s0, %s4438_s9 }
  0x98   : > { %p4442_p0 = pneg %p4441_p3  ;;  %p4448_p13 = por %p4447_p7, %p4446_p6 }
  0x9a   : > { %p4449_p8 = pnand %p4448_p13, %p4442_p0 }
  0x9c   : > { %4452 = shalt.err (!%p4449_p8)
}
  0x9d   : > { %4190 = dma.hbm_to_vmem [thread:$0]  (!%p5417_p1), %s992_s18, 16, %s995_s20, %s5429_s17  }
  0x9e   : > { %s5477_s5 = scalar_lea.hbm %s5144_s29, %s5427_s3  ;;  %s1012_s26 = scalar_lea.vmem [#allocation13], %s5424_s22 }
  0x9f   : > { %s1019_s4 = sshll.u32 %s1012_s26, 4  ;;  %s4453_s7 = scalar_lea.hbm %s5477_s5, 16  ;;  %s1020_s4 = int_to_ptr.vmem [resolvable:$true] %s1019_s4 }
  0xa0   : > { %p4454_p9 = scmp.ne.s32.totalorder %s5477_s5, %s4453_s7  ;;  %p6135_p8 = scmp.ne.s32.totalorder %s6133_s10, 0 }
  0xa1   : > { %s4458_s20 = scalar_lea.hbm %s5144_s29, 32  ;;  %p4459_p1 = scmp.lt.s32.totalorder %s5477_s5, %s5144_s29 }
  0xa2   : > { %p5484_p10 = pneg %p6135_p8  ;;  %p4460_p5 = scmp.lt.s32.totalorder %s4458_s20, %s4453_s7 }
  0xa4   : > { %s6136_s28 = scalar_select %p5484_p10, 1, 0 }
  0xa5   : > { %p4456_p2 = pnand %p5484_p10, %p4454_p9  ;;  %p4461_p12 = por %p4460_p5, %p4459_p1 }
  0xa7   : > { %p4457_p11 = pneg %p4456_p2 }
  0xa9   : > { %p4462_p4 = pnand %p4461_p12, %p4457_p11 }
  0xab   : > { %4465 = shalt.err (!%p4462_p4)
}
  0xac   : > { %s4466_s18 = scalar_lea.vmem %s1020_s4, 16  ;;  %s5076_s9 = smov [#allocation13]  }
  0xad   : > { %p4467_p3 = scmp.ne.s32.totalorder %s1020_s4, %s4466_s18  ;;  %s4471_s25 = sshll.u32 %s5076_s9, 4  ;;  %s4472_s25 = int_to_ptr.vmem [resolvable:$false] %s4471_s25 }
  0xae   : > { %s4473_s14 = scalar_lea.vmem %s4472_s25, 32  ;;  %p4474_p7 = scmp.lt.s32.totalorder %s1020_s4, %s4472_s25 }
  0xaf   : > { %p4469_p0 = pnand %p4467_p3, %p5484_p10  ;;  %p4475_p13 = scmp.lt.s32.totalorder %s4473_s14, %s4466_s18 }
  0xb1   : > { %p4470_p6 = pneg %p4469_p0  ;;  %p4476_p9 = por %p4475_p13, %p4474_p7 }
  0xb3   : > { %p4477_p2 = pnand %p4476_p9, %p4470_p6 }
  0xb5   : > { %4480 = shalt.err (!%p4477_p2)
}
  0xb6   : > { %4193 = dma.hbm_to_vmem [thread:$0]  (!%p6135_p8), %s5477_s5, 16, %s1020_s4, %s5429_s17  }
  0xb7   : > { %s1042_s0 = scalar_lea.hbm %s6110_s8, %s5427_s3  ;;  %s1037_s26 = scalar_lea.vmem [#allocation14], %s5424_s22 }
  0xb8   : > { %s1044_s7 = sshll.u32 %s1037_s26, 4  ;;  %s4481_s20 = scalar_lea.hbm %s1042_s0, 16  ;;  %s1045_s7 = int_to_ptr.vmem [resolvable:$true] %s1044_s7 }
  0xb9   : > { %p4482_p11 = scmp.ne.s32.totalorder %s1042_s0, %s4481_s20  ;;  %s4486_s18 = scalar_lea.hbm %s6110_s8, 32 }
  0xba   : > { %p4487_p12 = scmp.lt.s32.totalorder %s1042_s0, %s6110_s8  ;;  %p4488_p4 = scmp.lt.s32.totalorder %s4486_s18, %s4481_s20 }
  0xbb   : > { %p4484_p1 = pnand %p4482_p11, %p5484_p10 }
  0xbc   : > { %p4489_p3 = por %p4488_p4, %p4487_p12 }
  0xbd   : > { %p4485_p5 = pneg %p4484_p1 }
  0xbf   : > { %p4490_p0 = pnand %p4489_p3, %p4485_p5 }
  0xc1   : > { %4493 = shalt.err (!%p4490_p0)
}
  0xc2   : > { %s4494_s9 = scalar_lea.vmem %s1045_s7, 16  ;;  %s5077_s5 = smov [#allocation14]  }
  0xc3   : > { %p4495_p6 = scmp.ne.s32.totalorder %s1045_s7, %s4494_s9  ;;  %s4499_s4 = sshll.u32 %s5077_s5, 4  ;;  %s4500_s4 = int_to_ptr.vmem [resolvable:$false] %s4499_s4 }
  0xc4   : > { %s4501_s25 = scalar_lea.vmem %s4500_s4, 32  ;;  %p4502_p9 = scmp.lt.s32.totalorder %s1045_s7, %s4500_s4 }
  0xc5   : > { %p4497_p7 = pnand %p4495_p6, %p5484_p10  ;;  %p4503_p2 = scmp.lt.s32.totalorder %s4501_s25, %s4494_s9 }
  0xc7   : > { %p4498_p13 = pneg %p4497_p7  ;;  %p4504_p11 = por %p4503_p2, %p4502_p9 }
  0xc9   : > { %p4505_p1 = pnand %p4504_p11, %p4498_p13 }
  0xcb   : > { %4508 = shalt.err (!%p4505_p1)
}
  0xcc   : > { %4196 = dma.hbm_to_vmem [thread:$0]  (!%p6135_p8), %s1042_s0, 16, %s1045_s7, %s5429_s17  }
  0xcd   : > { %s1067_s14 = scalar_lea.hbm %s5164_s19, %s5427_s3  ;;  %s1062_s26 = scalar_lea.vmem [#allocation15], %s5424_s22 }
  0xce   : > { %s1069_s20 = sshll.u32 %s1062_s26, 4  ;;  %s4509_s18 = scalar_lea.hbm %s1067_s14, 16  ;;  %s1070_s20 = int_to_ptr.vmem [resolvable:$true] %s1069_s20 }
  0xcf   : > { %p4510_p5 = scmp.ne.s32.totalorder %s1067_s14, %s4509_s18  ;;  %s4514_s9 = scalar_lea.hbm %s5164_s19, 32 }
  0xd0   : > { %p4515_p3 = scmp.lt.s32.totalorder %s1067_s14, %s5164_s19  ;;  %p4516_p0 = scmp.lt.s32.totalorder %s4514_s9, %s4509_s18 }
  0xd1   : > { %p4512_p12 = pnand %p4510_p5, %p5484_p10 }
  0xd2   : > { %p4517_p6 = por %p4516_p0, %p4515_p3 }
  0xd3   : > { %p4513_p4 = pneg %p4512_p12 }
  0xd5   : > { %p4518_p7 = pnand %p4517_p6, %p4513_p4 }
  0xd7   : > { %4521 = shalt.err (!%p4518_p7)
}
  0xd8   : > { %s4522_s5 = scalar_lea.vmem %s1070_s20, 16  ;;  %s5078_s0 = smov [#allocation15]  }
  0xd9   : > { %p4523_p13 = scmp.ne.s32.totalorder %s1070_s20, %s4522_s5  ;;  %s4527_s7 = sshll.u32 %s5078_s0, 4  ;;  %s4528_s7 = int_to_ptr.vmem [resolvable:$false] %s4527_s7 }
  0xda   : > { %s4529_s4 = scalar_lea.vmem %s4528_s7, 32  ;;  %p4530_p11 = scmp.lt.s32.totalorder %s1070_s20, %s4528_s7 }
  0xdb   : > { %p4525_p9 = pnand %p4523_p13, %p5484_p10  ;;  %p4531_p1 = scmp.lt.s32.totalorder %s4529_s4, %s4522_s5 }
  0xdd   : > { %p4526_p2 = pneg %p4525_p9  ;;  %p4532_p5 = por %p4531_p1, %p4530_p11 }
  0xdf   : > { %p4533_p12 = pnand %p4532_p5, %p4526_p2 }
  0xe1   : > { %4536 = shalt.err (!%p4533_p12)
}
  0xe2   : > { %4199 = dma.hbm_to_vmem [thread:$0]  (!%p6135_p8), %s1067_s14, 16, %s1070_s20, %s5429_s17  }
  0xe3   : > { %s1092_s25 = scalar_lea.hbm %s5174_s30, %s5427_s3  ;;  %s1087_s26 = scalar_lea.vmem [#allocation16], %s5424_s22 }
  0xe4   : > { %s1094_s18 = sshll.u32 %s1087_s26, 4  ;;  %s4537_s9 = scalar_lea.hbm %s1092_s25, 16  ;;  %s1095_s18 = int_to_ptr.vmem [resolvable:$true] %s1094_s18 }
  0xe5   : > { %p4538_p4 = scmp.ne.s32.totalorder %s1092_s25, %s4537_s9  ;;  %s4542_s5 = scalar_lea.hbm %s5174_s30, 32 }
  0xe6   : > { %p4543_p6 = scmp.lt.s32.totalorder %s1092_s25, %s5174_s30  ;;  %p4544_p7 = scmp.lt.s32.totalorder %s4542_s5, %s4537_s9 }
  0xe7   : > { %p4540_p3 = pnand %p4538_p4, %p5484_p10 }
  0xe8   : > { %p4545_p13 = por %p4544_p7, %p4543_p6 }
  0xe9   : > { %p4541_p0 = pneg %p4540_p3 }
  0xeb   : > { %p4546_p9 = pnand %p4545_p13, %p4541_p0 }
  0xed   : > { %4549 = shalt.err (!%p4546_p9)
}
  0xee   : > { %s4550_s0 = scalar_lea.vmem %s1095_s18, 16  ;;  %s5079_s14 = smov [#allocation16]  }
  0xef   : > { %p4551_p2 = scmp.ne.s32.totalorder %s1095_s18, %s4550_s0  ;;  %s4555_s20 = sshll.u32 %s5079_s14, 4  ;;  %s4556_s20 = int_to_ptr.vmem [resolvable:$false] %s4555_s20 }
  0xf0   : > { %s4557_s7 = scalar_lea.vmem %s4556_s20, 32  ;;  %p4558_p5 = scmp.lt.s32.totalorder %s1095_s18, %s4556_s20 }
  0xf1   : > { %p4553_p11 = pnand %p4551_p2, %p5484_p10  ;;  %p4559_p12 = scmp.lt.s32.totalorder %s4557_s7, %s4550_s0 }
  0xf3   : > { %p4554_p1 = pneg %p4553_p11  ;;  %p4560_p4 = por %p4559_p12, %p4558_p5 }
  0xf5   : > { %p4561_p3 = pnand %p4560_p4, %p4554_p1 }
  0xf7   : > { %4564 = shalt.err (!%p4561_p3)
}
  0xf8   : > { %4202 = dma.hbm_to_vmem [thread:$0]  (!%p6135_p8), %s1092_s25, 16, %s1095_s18, %s5429_s17  }
  0xf9   : > { %s1109_s4 = scalar_lea.hbm %s6111_s6, %s5427_s3  ;;  %s1104_s26 = scalar_lea.vmem [#allocation17], %s5424_s22 }
  0xfa   : > { %s1111_s9 = sshll.u32 %s1104_s26, 4  ;;  %s4565_s5 = scalar_lea.hbm %s1109_s4, 16  ;;  %s1112_s9 = int_to_ptr.vmem [resolvable:$true] %s1111_s9 }
  0xfb   : > { %p4566_p0 = scmp.ne.s32.totalorder %s1109_s4, %s4565_s5  ;;  %s4570_s0 = scalar_lea.hbm %s6111_s6, 32 }
  0xfc   : > { %p4571_p13 = scmp.lt.s32.totalorder %s1109_s4, %s6111_s6  ;;  %p4572_p9 = scmp.lt.s32.totalorder %s4570_s0, %s4565_s5 }
  0xfd   : > { %p4568_p6 = pnand %p4566_p0, %p5484_p10 }
  0xfe   : > { %p4573_p2 = por %p4572_p9, %p4571_p13 }
  0xff   : > { %p4569_p7 = pneg %p4568_p6 }
 0x101   : > { %p4574_p11 = pnand %p4573_p2, %p4569_p7 }
 0x103   : > { %4577 = shalt.err (!%p4574_p11)
}
 0x104   : > { %s4578_s14 = scalar_lea.vmem %s1112_s9, 16  ;;  %s5080_s25 = smov [#allocation17]  }
 0x105   : > { %p4579_p1 = scmp.ne.s32.totalorder %s1112_s9, %s4578_s14  ;;  %s4583_s18 = sshll.u32 %s5080_s25, 4  ;;  %s4584_s18 = int_to_ptr.vmem [resolvable:$false] %s4583_s18 }
 0x106   : > { %s4585_s20 = scalar_lea.vmem %s4584_s18, 32  ;;  %p4586_p4 = scmp.lt.s32.totalorder %s1112_s9, %s4584_s18 }
 0x107   : > { %p4581_p5 = pnand %p4579_p1, %p5484_p10  ;;  %p4587_p3 = scmp.lt.s32.totalorder %s4585_s20, %s4578_s14 }
 0x109   : > { %p4582_p12 = pneg %p4581_p5  ;;  %p4588_p0 = por %p4587_p3, %p4586_p4 }
 0x10b   : > { %p4589_p6 = pnand %p4588_p0, %p4582_p12 }
 0x10d   : > { %4592 = shalt.err (!%p4589_p6)
}
 0x10e   : > { %4205 = dma.hbm_to_vmem [thread:$0]  (!%p6135_p8), %s1109_s4, 16, %s1112_s9, %s5429_s17  }
 0x10f   : > { %s1126_s7 = scalar_lea.hbm %s6109_s12, %s5427_s3  ;;  %s1121_s26 = scalar_lea.vmem [#allocation18], %s5424_s22 }
 0x110   : > { %s1128_s5 = sshll.u32 %s1121_s26, 4  ;;  %s4593_s0 = scalar_lea.hbm %s1126_s7, 16  ;;  %s1129_s5 = int_to_ptr.vmem [resolvable:$true] %s1128_s5 }
 0x111   : > { %p4594_p7 = scmp.ne.s32.totalorder %s1126_s7, %s4593_s0  ;;  %s4598_s14 = scalar_lea.hbm %s6109_s12, 32 }
 0x112   : > { %p4599_p2 = scmp.lt.s32.totalorder %s1126_s7, %s6109_s12  ;;  %p4600_p11 = scmp.lt.s32.totalorder %s4598_s14, %s4593_s0 }
 0x113   : > { %p4596_p13 = pnand %p4594_p7, %p5484_p10 }
 0x114   : > { %p4601_p1 = por %p4600_p11, %p4599_p2 }
 0x115   : > { %p4597_p9 = pneg %p4596_p13 }
 0x117   : > { %p4602_p5 = pnand %p4601_p1, %p4597_p9 }
 0x119   : > { %4605 = shalt.err (!%p4602_p5)
}
 0x11a   : > { %s4606_s25 = scalar_lea.vmem %s1129_s5, 16  ;;  %s5081_s4 = smov [#allocation18]  }
 0x11b   : > { %p4607_p12 = scmp.ne.s32.totalorder %s1129_s5, %s4606_s25  ;;  %s4611_s9 = sshll.u32 %s5081_s4, 4  ;;  %s4612_s9 = int_to_ptr.vmem [resolvable:$false] %s4611_s9 }
 0x11c   : > { %s4613_s18 = scalar_lea.vmem %s4612_s9, 32  ;;  %p4614_p0 = scmp.lt.s32.totalorder %s1129_s5, %s4612_s9 }
 0x11d   : > { %p4609_p4 = pnand %p4607_p12, %p5484_p10  ;;  %p4615_p6 = scmp.lt.s32.totalorder %s4613_s18, %s4606_s25 }
 0x11f   : > { %p4610_p3 = pneg %p4609_p4  ;;  %p4616_p7 = por %p4615_p6, %p4614_p0 }
 0x121   : > { %p4617_p13 = pnand %p4616_p7, %p4610_p3 }
 0x123   : > { %4620 = shalt.err (!%p4617_p13)
}
 0x124   : > { %4208 = dma.hbm_to_vmem [thread:$0]  (!%p6135_p8), %s1126_s7, 16, %s1129_s5, %s5429_s17  }
 0x125   : > { %s1151_s20 = scalar_lea.hbm %s5194_s27, %s5427_s3  ;;  %s1146_s26 = scalar_lea.vmem [#allocation19], %s5424_s22 }
 0x126   : > { %s1153_s0 = sshll.u32 %s1146_s26, 4  ;;  %s4621_s14 = scalar_lea.hbm %s1151_s20, 16  ;;  %s1154_s0 = int_to_ptr.vmem [resolvable:$true] %s1153_s0 }
 0x127   : > { %p4622_p9 = scmp.ne.s32.totalorder %s1151_s20, %s4621_s14  ;;  %s4626_s25 = scalar_lea.hbm %s5194_s27, 32 }
 0x128   : > { %p4627_p1 = scmp.lt.s32.totalorder %s1151_s20, %s5194_s27  ;;  %p4628_p5 = scmp.lt.s32.totalorder %s4626_s25, %s4621_s14 }
 0x129   : > { %p4624_p2 = pnand %p4622_p9, %p5484_p10 }
 0x12a   : > { %p4629_p12 = por %p4628_p5, %p4627_p1 }
 0x12b   : > { %p4625_p11 = pneg %p4624_p2 }
 0x12d   : > { %p4630_p4 = pnand %p4629_p12, %p4625_p11 }
 0x12f   : > { %4633 = shalt.err (!%p4630_p4)
}
 0x130   : > { %s4634_s4 = scalar_lea.vmem %s1154_s0, 16  ;;  %s5082_s7 = smov [#allocation19]  }
 0x131   : > { %p4635_p3 = scmp.ne.s32.totalorder %s1154_s0, %s4634_s4  ;;  %s4639_s5 = sshll.u32 %s5082_s7, 4  ;;  %s4640_s5 = int_to_ptr.vmem [resolvable:$false] %s4639_s5 }
 0x132   : > { %s4641_s9 = scalar_lea.vmem %s4640_s5, 32  ;;  %p4642_p7 = scmp.lt.s32.totalorder %s1154_s0, %s4640_s5 }
 0x133   : > { %p4637_p0 = pnand %p4635_p3, %p5484_p10  ;;  %p4643_p13 = scmp.lt.s32.totalorder %s4641_s9, %s4634_s4 }
 0x135   : > { %p4638_p6 = pneg %p4637_p0  ;;  %p4644_p9 = por %p4643_p13, %p4642_p7 }
 0x137   : > { %p4645_p2 = pnand %p4644_p9, %p4638_p6 }
 0x139   : > { %4648 = shalt.err (!%p4645_p2)
}
 0x13a   : > { %4211 = dma.hbm_to_vmem [thread:$0]  (!%p6135_p8), %s1151_s20, 16, %s1154_s0, %s5429_s17  }
 0x13b   : > { %p3782_p11 = scmp.ge.s32.totalorder %s5041_s15, 1  ;;  %p866_p1 = scmp.lt.s32.totalorder %s5041_s15, 5 }
 0x13c   : > { %s5083_s18 = smov [#allocation7]   ;;  %s5581_s25 = scalar_lea.hbm %s5204_s24, %s5427_s3 }
 0x13d   : > { %s879_s26 = sshll.u32 %s5083_s18, 4  ;;  %p5573_p5 = pnand %p3782_p11, %p866_p1  ;;  %s5577_s26 = int_to_ptr.vmem [resolvable:$true] %s879_s26 }
 0x13e   : > { %s1171_s4 = scalar_lea.vmem [#allocation20], %s5424_s22  ;;  %s4649_s0 = scalar_lea.hbm %s5581_s25, 16 }
 0x13f   : > { %s6137_s14 = scalar_select %p5573_p5, 1, 0 }
 0x140   : > { %s1178_s20 = sshll.u32 %s1171_s4, 4  ;;  %p4650_p4 = scmp.ne.s32.totalorder %s5581_s25, %s4649_s0  ;;  %s1179_s20 = int_to_ptr.vmem [resolvable:$true] %s1178_s20 }
 0x141   : > { %s4654_s7 = scalar_lea.hbm %s5204_s24, 32  ;;  %p4655_p6 = scmp.lt.s32.totalorder %s5581_s25, %s5204_s24 }
 0x142   : > { %p4652_p3 = pnand %p4650_p4, %p5484_p10  ;;  %p4656_p7 = scmp.lt.s32.totalorder %s4654_s7, %s4649_s0 }
 0x144   : > { %p4653_p0 = pneg %p4652_p3  ;;  %p4657_p13 = por %p4656_p7, %p4655_p6 }
 0x146   : > { %p4658_p9 = pnand %p4657_p13, %p4653_p0 }
 0x148   : > { %4661 = shalt.err (!%p4658_p9)
}
 0x149   : > { %s4662_s5 = scalar_lea.vmem %s1179_s20, 16  ;;  %s5084_s9 = smov [#allocation20]  }
 0x14a   : > { %p4663_p2 = scmp.ne.s32.totalorder %s1179_s20, %s4662_s5  ;;  %s4667_s18 = sshll.u32 %s5084_s9, 4  ;;  %s4668_s18 = int_to_ptr.vmem [resolvable:$false] %s4667_s18 }
 0x14b   : > { %s4669_s4 = scalar_lea.vmem %s4668_s18, 32  ;;  %p4670_p12 = scmp.lt.s32.totalorder %s1179_s20, %s4668_s18 }
 0x14c   : > { %p4665_p11 = pnand %p4663_p2, %p5484_p10  ;;  %p4671_p5 = scmp.lt.s32.totalorder %s4669_s4, %s4662_s5 }
 0x14e   : > { %p4666_p1 = pneg %p4665_p11  ;;  %p4672_p4 = por %p4671_p5, %p4670_p12 }
 0x150   : > { %p4673_p3 = pnand %p4672_p4, %p4666_p1 }
 0x152   : > { %4676 = shalt.err (!%p4673_p3)
}
 0x153   : > { %4214 = dma.hbm_to_vmem [thread:$0]  (!%p6135_p8), %s5581_s25, 16, %s1179_s20, %s5429_s17  }
 0x154   : > { %p6138_p0 = scmp.eq.s32.totalorder %s5327_s16, 0  ;;  %p6139_p6 = scmp.ne.s32.totalorder %s6137_s14, 0 }
 0x155   : > { %s5085_s7 = smov [#allocation10]   ;;  %s4688_s18 = scalar_lea.vmem %s5577_s26, 128 }
 0x156   : > { %p6140_p7 = pneg %p6139_p6  ;;  %s890_s5 = sshll.u32 %s5085_s7, 4  ;;  %s891_s5 = int_to_ptr.vmem [resolvable:$true] %s890_s5 }
 0x157   : > { %p4689_p12 = scmp.ne.s32.totalorder %s5577_s26, %s4688_s18  ;;  %p4696_p11 = scmp.lt.s32.totalorder %s5577_s26, %s5577_s26 }
 0x158   : > { %p5604_p13 = pnand %p6140_p7, %p6138_p0  ;;  %p4697_p1 = scmp.lt.s32.totalorder %s4688_s18, %s4688_s18 }
 0x15a   : > { %s6141_s0 = scalar_select %p5604_p13, 1, 0 }
 0x15b   : > { %p5610_p5 = pneg %p5604_p13  ;;  %p4698_p4 = por %p4697_p1, %p4696_p11 }
 0x15d   : > { %s6142_s9 = scalar_select %p5610_p5, 1, 0 }
 0x15e   : > { %p4691_p9 = pnand %p4689_p12, %p5610_p5 }
 0x160   : > { %p4692_p2 = pneg %p4691_p9 }
 0x162   : > { %p4699_p3 = pnand %p4698_p4, %p4692_p2 }
 0x164   : > { %4702 = shalt.err (!%p4699_p3)
}
 0x165   : > { %s6143_s25 = sld [smem:[#allocation39_spill]]  ;;  %s4714_s20 = scalar_lea.vmem %s891_s5, 128 }
 0x166   : > { %p4715_p0 = scmp.ne.s32.totalorder %s891_s5, %s4714_s20  ;;  %p4722_p8 = scmp.lt.s32.totalorder %s891_s5, %s891_s5 }
 0x167   : > { %p4723_p12 = scmp.lt.s32.totalorder %s4714_s20, %s4714_s20 }
 0x168   : > { %p4717_p7 = pnand %p4715_p0, %p5610_p5 }
 0x169   : > { %p4724_p9 = por %p4723_p12, %p4722_p8 }
 0x16a   : > { %p4718_p6 = pneg %p4717_p7 }
 0x16b   : > { %4168 = dma.hbm_to_vmem [thread:$0]  (!%p5604_p13), %s6143_s25, 128, %s5577_s26, [#allocation8]  }
 0x16c   : > { %p4725_p10 = pnand %p4724_p9, %p4718_p6 }
 0x16e   : > { %4728 = shalt.err (!%p4725_p10)
}
 0x16f   : > { %s6144_s4 = sld [smem:[#allocation41_spill]]  ;;  %s5086_s6 = smov [#allocation11]  }
 0x170   : > { %s6145_s7 = sld [smem:[#allocation52_spill]]  ;;  %s901_s8 = sshll.u32 %s5086_s6, 4  ;;  %s902_s8 = int_to_ptr.vmem [resolvable:$true] %s901_s8 }
 0x171   : > { %s4740_s25 = scalar_lea.vmem %s902_s8, 16  ;;  %s4747_s20 = scalar_lea.vmem %s902_s8, 32 }
 0x172   : > { %p4741_p2 = scmp.ne.s32.totalorder %s902_s8, %s4740_s25  ;;  %p4748_p8 = scmp.lt.s32.totalorder %s902_s8, %s902_s8 }
 0x173   : > { %p4749_p10 = scmp.lt.s32.totalorder %s4747_s20, %s4740_s25 }
 0x174   : > { %p4743_p11 = pnand %p4741_p2, %p5610_p5 }
 0x175   : > { %4171 = dma.hbm_to_vmem [thread:$0]  (!%p5604_p13), %s6144_s4, 128, %s891_s5, [#allocation8]  }
 0x176   : > { %s6146_s18 = smov %s6145_s7  ;;  %s5631_s26 = scalar_lea.hbm %s6145_s7, %s5427_s3 }
 0x177   : > { %p4744_p1 = pneg %p4743_p11  ;;  %p4750_p6 = por %p4749_p10, %p4748_p8 }
 0x179   : > { %p4751_p4 = pnand %p4750_p6, %p4744_p1 }
 0x17b   : > { %4754 = shalt.err (!%p4751_p4)
}
 0x17c   : > { %s6147_s12 = sld [smem:[#allocation42_spill]]  ;;  %s1188_s6 = scalar_lea.vmem [#allocation21], %s5424_s22 }
 0x17d   : > { %s1195_s5 = sshll.u32 %s1188_s6, 4  ;;  %s5087_s4 = smov [#allocation23]   ;;  %s1196_s5 = int_to_ptr.vmem [resolvable:$true] %s1195_s5 }
 0x17e   : > { %s915_s7 = sshll.u32 %s5087_s4, 4  ;;  %s4755_s25 = scalar_lea.hbm %s5631_s26, 16  ;;  %s916_s7 = int_to_ptr.vmem [resolvable:$true] %s915_s7 }
 0x17f   : > { %p4756_p3 = scmp.ne.s32.totalorder %s5631_s26, %s4755_s25  ;;  %p6148_p0 = scmp.ne.s32.totalorder %s6136_s28, 0 }
 0x180   : > { %s4760_s20 = scalar_lea.hbm %s6146_s18, 32  ;;  %p4761_p9 = scmp.lt.s32.totalorder %s5631_s26, %s6146_s18 }
 0x181   : > { %p4758_p7 = pnand %p4756_p3, %p6148_p0  ;;  %p4762_p2 = scmp.lt.s32.totalorder %s4760_s20, %s4755_s25 }
 0x182   : > { %4174 = dma.hbm_to_vmem [thread:$0]  (!%p5604_p13), %s6147_s12, 16, %s902_s8, [#allocation12]  }
 0x183   : > { %p4759_p12 = pneg %p4758_p7  ;;  %p4763_p11 = por %p4762_p2, %p4761_p9 }
 0x185   : > { %p4764_p1 = pnand %p4763_p11, %p4759_p12 }
 0x187   : > { %4767 = shalt.err (!%p4764_p1)
}
 0x188   : > { %s4768_s13 = scalar_lea.vmem %s1196_s5, 16  ;;  %s5088_s8 = smov [#allocation21]  }
 0x189   : > { %p4769_p8 = scmp.ne.s32.totalorder %s1196_s5, %s4768_s13  ;;  %s4773_s12 = sshll.u32 %s5088_s8, 4  ;;  %s4774_s12 = int_to_ptr.vmem [resolvable:$false] %s4773_s12 }
 0x18a   : > { %s4775_s6 = scalar_lea.vmem %s4774_s12, 32  ;;  %p4776_p4 = scmp.lt.s32.totalorder %s1196_s5, %s4774_s12 }
 0x18b   : > { %p4771_p10 = pnand %p4769_p8, %p6148_p0  ;;  %p4777_p13 = scmp.lt.s32.totalorder %s4775_s6, %s4768_s13 }
 0x18d   : > { %p4772_p6 = pneg %p4771_p10  ;;  %p4778_p3 = por %p4777_p13, %p4776_p4 }
 0x18f   : > { %p4779_p7 = pnand %p4778_p3, %p4772_p6 }
 0x191   : > { %4782 = shalt.err (!%p4779_p7)
}
 0x192   : > { %p6149_p5 = scmp.ne.s32.totalorder %s6133_s10, 0  ;;  %s4794_s4 = scalar_lea.vmem %s916_s7, 128 }
 0x193   : > { %p4795_p12 = scmp.ne.s32.totalorder %s916_s7, %s4794_s4  ;;  %p6150_p9 = scmp.ne.s32.totalorder %s6142_s9, 0 }
 0x194   : > { %4217 = dma.hbm_to_vmem [thread:$0]  (!%p6149_p5), %s5631_s26, 16, %s1196_s5, %s5429_s17  }
 0x195   : > { %p4797_p2 = pnand %p4795_p12, %p6150_p9  ;;  %p4802_p1 = scmp.lt.s32.totalorder %s916_s7, %s916_s7 }
 0x196   : > { %p4803_p8 = scmp.lt.s32.totalorder %s4794_s4, %s4794_s4 }
 0x197   : > { %p4798_p11 = pneg %p4797_p2 }
 0x198   : > { %p4804_p10 = por %p4803_p8, %p4802_p1 }
 0x19a   : > { %p4805_p0 = pnand %p4804_p10, %p4798_p11 }
 0x19c   : > { %4808 = shalt.err (!%p4805_p0)
}
 0x19d   : > { %p6151_p13 = scmp.ne.s32.totalorder %s6141_s0, 0  ;;  %s6152_s13 = sld [smem:[#allocation55_spill]] }
 0x19e   : > { %s5089_s25 = smov [#allocation24]   ;;  %s5090_s26 = smov [#allocation25]  }
 0x19f   : > { %s926_s20 = sshll.u32 %s5089_s25, 4  ;;  %s949_s5 = sshll.u32 %s5090_s26, 4  ;;  %s927_s20 = int_to_ptr.vmem [resolvable:$true] %s926_s20  ;;  %s950_s5 = int_to_ptr.vmem [resolvable:$true] %s949_s5 }
 0x1a0   : > { %s4820_s8 = scalar_lea.vmem %s927_s20, 16  ;;  %s4827_s12 = scalar_lea.vmem %s927_s20, 32 }
 0x1a1   : > { %p4821_p6 = scmp.ne.s32.totalorder %s927_s20, %s4820_s8  ;;  %p4828_p7 = scmp.lt.s32.totalorder %s927_s20, %s927_s20 }
 0x1a2   : > { %p4829_p12 = scmp.lt.s32.totalorder %s4827_s12, %s4820_s8 }
 0x1a3   : > { %4177 = dma.hbm_to_vmem [thread:$0]  (!%p6151_p13), %s6152_s13, 128, %s916_s7, [#allocation8]  }
 0x1a4   : > { %p4823_p4 = pnand %p4821_p6, %p6150_p9  ;;  %p4830_p2 = por %p4829_p12, %p4828_p7 }
 0x1a6   : > { %p4824_p3 = pneg %p4823_p4 }
 0x1a8   : > { %p4831_p0 = pnand %p4830_p2, %p4824_p3 }
 0x1aa   : > { %4834 = shalt.err (!%p4831_p0)
}
 0x1ab   : > { %s6153_s6 = sld [smem:[#allocation56_spill]]  ;;  %s4846_s7 = scalar_lea.vmem %s950_s5, 16 }
 0x1ac   : > { %p4847_p11 = scmp.ne.s32.totalorder %s950_s5, %s4846_s7  ;;  %s4853_s4 = scalar_lea.vmem %s950_s5, 32 }
 0x1ad   : > { %p4854_p10 = scmp.lt.s32.totalorder %s950_s5, %s950_s5  ;;  %p4855_p6 = scmp.lt.s32.totalorder %s4853_s4, %s4846_s7 }
 0x1ae   : > { %p4849_p1 = pnand %p4847_p11, %p6150_p9 }
 0x1af   : > { %p4856_p4 = por %p4855_p6, %p4854_p10 }
 0x1b0   : > { %p4850_p8 = pneg %p4849_p1 }
 0x1b1   : > { %4180 = dma.hbm_to_vmem [thread:$0]  (!%p6151_p13), %s6153_s6, 16, %s927_s20, [#allocation12]  }
 0x1b2   : > { %p4857_p5 = pnand %p4856_p4, %p4850_p8 }
 0x1b4   : > { %4860 = shalt.err (!%p4857_p5)
}
 0x1b5   : > { %s6154_s13 = sld [smem:[#allocation61_spill]]  ;;  %s1205_s9 = scalar_lea.vmem [#allocation22], %s5424_s22 }
 0x1b6   : > { %s6155_s25 = sld [smem:[#allocation53_spill]]  ;;  %s1212_s26 = sshll.u32 %s1205_s9, 4  ;;  %s1213_s26 = int_to_ptr.vmem [resolvable:$true] %s1212_s26 }
 0x1b7   : > { %p6156_p3 = scmp.ne.s32.totalorder %s6136_s28, 0 }
 0x1bb   : > { %4183 = dma.hbm_to_vmem [thread:$0]  (!%p6151_p13), %s6154_s13, 16, %s950_s5, [#allocation26]  }
 0x1bc   : > { %s1210_s20 = scalar_lea.hbm %s6155_s25, %s5427_s3  ;;  %s4866_s12 = scalar_lea.hbm %s6155_s25, 32 }
 0x1bd   : > { %s4861_s8 = scalar_lea.hbm %s1210_s20, 16  ;;  %p4867_p5 = scmp.lt.s32.totalorder %s1210_s20, %s6155_s25 }
 0x1be   : > { %p4862_p9 = scmp.ne.s32.totalorder %s1210_s20, %s4861_s8  ;;  %p4868_p2 = scmp.lt.s32.totalorder %s4866_s12, %s4861_s8 }
 0x1c0   : > { %p4864_p7 = pnand %p4862_p9, %p6156_p3  ;;  %p4869_p0 = por %p4868_p2, %p4867_p5 }
 0x1c2   : > { %p4865_p12 = pneg %p4864_p7 }
 0x1c4   : > { %p4870_p11 = pnand %p4869_p0, %p4865_p12 }
 0x1c6   : > { %4873 = shalt.err (!%p4870_p11)
}
 0x1c7   : > { %s4874_s0 = scalar_lea.vmem %s1213_s26, 16  ;;  %s5091_s3 = smov [#allocation22]  }
 0x1c8   : > { %p4875_p1 = scmp.ne.s32.totalorder %s1213_s26, %s4874_s0  ;;  %s4879_s22 = sshll.u32 %s5091_s3, 4  ;;  %s4880_s22 = int_to_ptr.vmem [resolvable:$false] %s4879_s22 }
 0x1c9   : > { %s4881_s5 = scalar_lea.vmem %s4880_s22, 32  ;;  %p4882_p10 = scmp.lt.s32.totalorder %s1213_s26, %s4880_s22 }
 0x1ca   : > { %p4877_p13 = pnand %p4875_p1, %p6156_p3  ;;  %p4883_p6 = scmp.lt.s32.totalorder %s4881_s5, %s4874_s0 }
 0x1cc   : > { %p4878_p8 = pneg %p4877_p13  ;;  %p4884_p4 = por %p4883_p6, %p4882_p10 }
 0x1ce   : > { %p4885_p9 = pnand %p4884_p4, %p4878_p8 }
 0x1d0   : > { %4888 = shalt.err (!%p4885_p9)
}
 0x1d1   : > { %p6157_p7 = scmp.ne.s32.totalorder %s6133_s10, 0  ;;  %p6158_p12 = scmp.ne.s32.totalorder %s6137_s14, 0 }
 0x1d2   : > { %s1223_s28 = sand.u32 (!%p6158_p12), 1, %s5327_s16   ;;  %s5683_s6 = sand.u32 (!%p6158_p12), 1, %s5017_s1  }
 0x1d3   : > { %4220 = dma.hbm_to_vmem [thread:$0]  (!%p6157_p7), %s1210_s20, 16, %s1213_s26, %s5429_s17  }
 0x1d4   : > { %1221 = sbr.rel (%p6158_p12) target bundleno = 3845 (0xf05), region = 144  ;;  %s3804_s7 = sshll.u32 (!%p6158_p12), %s5683_s6, 3 }
 0x1d5   : > { %s1224_s4 = scalar_lea.sflag (!%p6158_p12), [#allocation5], %s1223_s28  ;;  %s5686_s13 = scalar_lea.vmem (!%p6158_p12), [#allocation4], %s3804_s7 }
 0x1d6   : > { %p6159_p3 = scmp.ne.s32.totalorder (!%p6158_p12), %s6121_s21, 0 }
 0x1d9   : > { %4960 = dma.done.wait (%p6159_p3), %s1224_s4, 128  }
 0x1da   : > { %4962 = vsyncadd (%p6159_p3), %s1224_s4, 4294967168  ;;  %p6160_p5 = scmp.eq.s32.totalorder %s5327_s16, 0 }
 0x1dc   : > { %4964 = dma.done.wait (%p6160_p5), [#allocation8], 128   ;;  %p6161_p2 = pmov %p6160_p5 }
 0x1de   : > { %4966 = vsyncadd (%p6161_p2), [#allocation8], 4294967168 }
 0x1df   : > { %4968 = dma.done.wait (%p6159_p3), %s1224_s4, 16  }
 0x1e0   : > { %4970 = vsyncadd (%p6159_p3), %s1224_s4, 4294967280  ;;  %p6162_p0 = pmov %p6161_p2 }
 0x1e2   : > { %4972 = dma.done.wait (%p6162_p0), [#allocation8], 128   ;;  %p6163_p11 = pmov %p6162_p0 }
 0x1e3   : > { %p6164_p1 = pmov %p6162_p0 }
 0x1e4   : > { %4974 = vsyncadd (%p6163_p11), [#allocation8], 4294967168 }
 0x1e5   : > { %4976 = dma.done.wait (%p6164_p1), [#allocation12], 16   ;;  %p6165_p13 = pmov %p6162_p0 }
 0x1e6   : > { %s6166_s10 = sld [smem:[#allocation74_spill]]  ;;  %s5710_s14 = sand.u32 1, %s5005_s23  }
 0x1e7   : > { %4978 = vsyncadd (%p6165_p13), [#allocation12], 4294967280 }
 0x1ec   : > { %p6167_p8 = scmp.ne.s32.totalorder %s6166_s10, 0 }
 0x1ee   : > { %4980 = dma.done.wait (%p6167_p8), %s1224_s4, 160  }
 0x1ef   : > { %4982 = vsyncadd (%p6167_p8), %s1224_s4, 4294967136  ;;  %p6168_p10 = pmov %p6162_p0 }
 0x1f0   : > { %p6169_p6 = pmov %p6162_p0 }
 0x1f1   : > { %4984 = dma.done.wait (%p6168_p10), [#allocation8], 128  }
 0x1f2   : > { %4986 = vsyncadd (%p6169_p6), [#allocation8], 4294967168  ;;  %p6170_p4 = pmov %p6162_p0 }
 0x1f3   : > { %p6171_p9 = pmov %p6162_p0 }
 0x1f4   : > { %4988 = dma.done.wait (%p6170_p4), [#allocation12], 16  }
 0x1f5   : > { %4990 = vsyncadd (%p6171_p9), [#allocation12], 4294967280  ;;  %p6172_p7 = pmov %p6162_p0 }
 0x1f6   : > { %p6173_p12 = pmov %p6162_p0 }
 0x1f7   : > { %4992 = dma.done.wait (%p6172_p7), [#allocation26], 16  }
 0x1f8   : > { %4994 = vsyncadd (%p6173_p12), [#allocation26], 4294967280  ;;  %s6174_s28 = sld [smem:[#allocation67_spill]]  ;;  %s1490_s18 = scalar_lea.vmem [#allocation27], %s5683_s6 }
 0x1f9   : > { %s6175_s7 = sld [smem:[#allocation43_spill]] }
 0x1fa   : > { %s6176_s4 = sld [smem:[#allocation44_spill]] }
 0x1fb   : > { %s6177_s10 = sld [smem:[#allocation46_spill]] }
 0x1fc   : > { %s6178_s17 = sld [smem:[#allocation47_spill]] }
 0x1fd   : > { %s6179_s5 = sld [smem:[#allocation50_spill]] }
 0x1fe   : > { %s6180_s22 = sld [smem:[#allocation51_spill]]  ;;  %p1491_p3 = scmp.lt.s32.totalorder %s6174_s28, 1 }
 0x1ff   : > { %p3823_p5 = scmp.ne.s32.totalorder %s6174_s28, 0 }
 0x200   : > { %s1492_s3 = scalar_select %p1491_p3, %s6174_s28, 1 }
 0x201   : > { %1524 = sbr.rel (%p3823_p5) target bundleno = 719 (0x2cf), region = 220 }
 0x202   : > { %s3866_s0 = sshll.u32 %s1492_s3, 5  ;;  %s3871_s12 = sshll.u32 %s1492_s3, 6 }
 0x203   : > { %s5741_s8 = scalar_lea.vmem %s6175_s7, %s3866_s0  ;;  %s5744_s26 = scalar_lea.vmem %s6176_s4, %s3866_s0 }
 0x204   : > { %s5747_s9 = scalar_lea.vmem %s6177_s10, %s3866_s0  ;;  %s5750_s16 = scalar_lea.vmem %s6178_s17, %s3866_s0 }
 0x205   : > { %s5753_s21 = scalar_lea.vmem %s6179_s5, %s3866_s0  ;;  %s5756_s20 = scalar_lea.vmem %s6180_s22, %s3871_s12 }
 0x206   : > { %v1526_v0 = vld [vmem:[#allocation10] sm:$0xff]  ;;  %vm1534_vm0 = vcmask 64512   ;;  %v5092_v2 = vmov 0.0   ;;  %vm5093_vm1 = vmmov 0   ;;  %v3824_v3 = vld [vmem:[#allocation11] ss:$0 sm:$0xff] }
 0x207   : > { %v1525_v1 = vld [vmem:[%s5686_s13] sm:$0xff]  ;;  %3946 = vmatprep.subr.mxu0 %v5092_v2  ;;  %3948 = vmatprep.mubr.msk.f32.mxu0 %vm5093_vm1, %v5092_v2  ;;  %v1608_v5 = vld [vmem:[#allocation7] sm:$0xff]  ;;  %vm1610_vm2 = vcmask 261120  }
 0x208   : > { %3947 = vmatpush3.msra.mxu0 %v1526_v0 }
 0x209   : > { %3949 = vmatmul.mubr.msk.f32.vlgmr.msra.gmra.mxu0 %vm1534_vm0, %v1525_v1 }
 0x2c9   : > { %v1604_v4 = vpop.f32.mrf.mxu0 }
 0x2ca   : > { %v1605_v6 = vadd.f32 %v3824_v3, %v1604_v4 }
 0x2cb   : > { %v3950_v7 = vpop.f32.mrf.mxu0 }
 0x2cc   : > { %v1609_v8 = vadd.f32 %v1608_v5, %v1605_v6 }
 0x2ce   : > { %1611 = vst.msk [vmem:[#allocation2] sm:$0xff] %vm1610_vm2, %v1609_v8 }
 0x2cf PF: > { %v1616_v9 = vld [vmem:[%s5741_s8 + $0x18] sm:$0xff]  ;;  %v5094_v10 = vmov 0.0   ;;  %v1615_v11 = vld [vmem:[%s5741_s8 + $0x10] sm:$0xff]  ;;  %vm5095_vm3 = vmmov 0   ;;  %v1614_v12 = vld [vmem:[%s5741_s8 + $0x8] sm:$0xff]  ;;  %vm1624_vm4 = vcmask 261120  }
 0x2d0   : > { %3951 = vmatprep.subr.mxu1 %v5094_v10  ;;  %3959 = vmatprep.mubr.msk.f32.mxu1 %vm5095_vm3, %v5094_v10  ;;  %v1613_v13 = vld [vmem:[%s5741_s8] sm:$0xff]  ;;  %v1702_v15 = vld [vmem:[%s5744_s26 + $0x18] sm:$0xff]  ;;  %v1701_v16 = vld [vmem:[%s5744_s26 + $0x10] sm:$0xff]  ;;  %s6181_s13 = scalar_lea.vmem [#allocation13], %s5710_s14  ;;  %s6182_s17 = scalar_lea.vmem [#allocation14], %s5710_s14  ;;  %vm1861_vm5 = vcmask 64512  }
 0x2d1   : > { %3952 = vmatpush3.msra.mxu1 %v1616_v9  ;;  %3973 = vmatprep.subr.mxu0 %v5094_v10  ;;  %v1700_v17 = vld [vmem:[%s5744_s26 + $0x8] sm:$0xff]  ;;  %v1699_v18 = vld [vmem:[%s5744_s26] sm:$0xff]  ;;  %v1783_v19 = vld [vmem:[%s5747_s9 + $0x18] sm:$0xff]  ;;  %s5097_s26 = smov 120   ;;  %s5098_s8 = smov 104   ;;  %vm2193_vm6 = vcmask 130112  }
 0x2d2   : > { %3953 = vmatprep.subr.mxu1 %v5094_v10  ;;  %3981 = vmatprep.mubr.msk.f32.mxu0 %vm5095_vm3, %v5094_v10  ;;  %v1782_v20 = vld [vmem:[%s5747_s9 + $0x10] sm:$0xff]  ;;  %v1781_v21 = vld [vmem:[%s5747_s9 + $0x8] sm:$0xff]  ;;  %v1780_v22 = vld [vmem:[%s5747_s9] sm:$0xff]  ;;  %s5096_s9 = smov 112   ;;  %s6183_s12 = scalar_lea.vmem [#allocation15], %s5710_s14  ;;  %vm2364_vm7 = vcmask 195712  }
 0x2d3   : > { %3954 = vmatpush3.msra.mxu1 %v1615_v11  ;;  %3974 = vmatpush3.msra.mxu0 %v1783_v19  ;;  %v3826_v25 = vld [vmem:[%s6181_s13] ss:$0 sm:$0xff]  ;;  %s5099_s0 = smov 8   ;;  %s5100_s3 = smov 16   ;;  %vm2535_vm8 = vcmask 261312   ;;  %vm2753_vm9 = vcmask 523264  }
 0x2d4   : > { %3955 = vmatprep.subr.mxu1 %v5094_v10  ;;  %3975 = vmatprep.subr.mxu0 %v5094_v10  ;;  %v3828_v26 = vld [vmem:[%s6182_s17] ss:$0 sm:$0xff]  ;;  %s5101_s22 = smov 24   ;;  %s6184_s5 = scalar_lea.vmem [#allocation16], %s5710_s14 }
 0x2d5   : > { %3956 = vmatpush3.msra.mxu1 %v1614_v12  ;;  %v5773_v14 = vld [vmem:[#allocation2] sm:$0xff]  ;;  %3976 = vmatpush3.msra.mxu0 %v1782_v20  ;;  %s6186_s28 = scalar_lea.vmem [#allocation18], %s5710_s14  ;;  %s6187_s7 = scalar_lea.vmem [#allocation19], %s5710_s14 }
 0x2d6   : > { %3957 = vmatprep.subr.mxu1 %v5094_v10  ;;  %3977 = vmatprep.subr.mxu0 %v5094_v10  ;;  %v3830_v32 = vld [vmem:[%s6183_s12] ss:$0 sm:$0xff]  ;;  %s6188_s4 = scalar_lea.vmem [#allocation20], %s5710_s14  ;;  %s6190_s10 = scalar_lea.vmem [#allocation22], %s5710_s14 }
 0x2d7   : > { %3958 = vmatpush3.msra.mxu1 %v1613_v13  ;;  %3978 = vmatpush3.msra.mxu0 %v1781_v21 }
 0x2d8   : > { %3960 = vmatmul.mubr.msk.f32.vlgmr.msra.gmra.mxu1 %vm1624_vm4, %v5773_v14  ;;  %3962 = vmatprep.subr.mxu1 %v5094_v10 }
 0x2d9   : > { %3963 = vmatpush3.msra.mxu1 %v1702_v15  ;;  %3970 = vmatprep.mubr.msk.f32.mxu1 %vm5095_vm3, %v5094_v10 }
 0x2da   : > { %3964 = vmatprep.subr.mxu1 %v5094_v10  ;;  %3979 = vmatprep.subr.mxu0 %v5094_v10 }
 0x2db   : > { %3965 = vmatpush3.msra.mxu1 %v1701_v16  ;;  %3980 = vmatpush3.msra.mxu0 %v1780_v22 }
 0x2dc   : > { %3966 = vmatprep.subr.mxu1 %v5094_v10  ;;  %3982 = vmatmul.mubr.msk.f32.vlgmr.msra.gmra.mxu0 %vm1624_vm4, %v5773_v14 }
 0x2dd   : > { %3967 = vmatpush3.msra.mxu1 %v1700_v17  ;;  %3994 = vmatprep.subr.mxu0 %v5094_v10 }
 0x2de   : > { %3968 = vmatprep.subr.mxu1 %v5094_v10  ;;  %3996 = vmatprep.mubr.msk.f32.mxu0 %vm5095_vm3, %v5094_v10 }
 0x2df   : > { %3969 = vmatpush3.msra.mxu1 %v1699_v18 }
 0x2e0   : > { %3971 = vmatmul.mubr.msk.f32.vlgmr.msra.gmra.mxu1 %vm1624_vm4, %v5773_v14  ;;  %3984 = vmatprep.subr.mxu1 %v5094_v10 }
 0x2e1   : > { %3986 = vmatprep.mubr.msk.f32.mxu1 %vm5095_vm3, %v5094_v10 }
 0x398   : > { %v1694_v23 = vpop.f32.mrf.mxu1 }
 0x399   : > { %v1695_v28 = vadd.f32 %v3826_v25, %v1694_v23 }
 0x39a   : > { %v3961_v24 = vpop.f32.mrf.mxu1 }
 0x39b   : > { %v1698_v31 = vmul.f32 0.35355338, %v1695_v28 }
 0x39c   : > { %v1857_v33 = vpop.f32.mrf.mxu0 }
 0x39d   : > { %v5822_v34 = vadd.f32 %v3830_v32, %v1857_v33  ;;  %v2538_v33 = vld [vmem:[%s5750_s16] sm:$0xff] }
 0x39e   : > { %v3983_v35 = vpop.f32.mrf.mxu0 }
 0x3a0   : > { %v1776_v27 = vpop.f32.mrf.mxu1 }
 0x3a1   : > { %v1777_v29 = vadd.f32 %v3828_v26, %v1776_v27 }
 0x3a2   : > { %v3972_v30 = vpop.f32.mrf.mxu1 }
 0x3a3   : > { %2197 = vrot.lane.b32.xlu1 %v1777_v29, %s5096_s9  ;;  %2025 = vrot.lane.b32.xlu0 %v1777_v29, %s5097_s26  ;;  %v2540_v30 = vld [vmem:[%s5750_s16 + $0x10] sm:$0xff] }
 0x3a4   : > { %3985 = vmatpush3.xpose.msk.msra.mxu1 %vm1861_vm5, %v1777_v29 }
 0x3a5   : > { %3989 = vmatprep.subr.mxu1 %v5094_v10 }
 0x3a7   : > { %3987 = vmatmul.mubr.msk.f32.vlgmr.msra.gmra.mxu1 %vm1861_vm5, %v1698_v31  ;;  %2195 = vrot.lane.b32.xlu1 %v1698_v31, %s5096_s9 }
 0x3a8   : > { %2023 = vrot.lane.b32.xlu0 %v1698_v31, %s5097_s26  ;;  %3991 = vmatprep.mubr.msk.f32.mxu1 %vm5095_vm3, %v5094_v10 }
 0x3a9   : > { %3990 = vmatpush3.msra.mxu1 %v5822_v34 }
 0x3aa   : > { %3999 = vmatprep.subr.mxu1 %v5094_v10 }
 0x3ab   : > { %2366 = vrot.lane.b32.xlu1 %v1698_v31, %s5098_s8  ;;  %v2539_v31 = vld [vmem:[%s5750_s16 + $0x8] sm:$0xff] }
 0x3ac   : > { %2368 = vrot.lane.b32.xlu0 %v1777_v29, %s5098_s8  ;;  %v2541_v29 = vld [vmem:[%s5750_s16 + $0x18] sm:$0xff]  ;;  %s6191_s16 = sld [smem:[#allocation67_spill]] }
 0x3b2   : > { %p3854_p2 = scmp.ne.s32.totalorder %s6191_s16, 1 }
 0x3b3   : > { %s6192_s13 = sld [smem:[#allocation54_spill]] (!%p3854_p2) }
 0x3b4   : > { %s6194_s17 = sld [smem:[#allocation57_spill]] (!%p3854_p2) }
 0x3b5   : > { %s6198_s12 = sld [smem:[#allocation63_spill]] (!%p3854_p2) }
 0x415   : > { %v2026_v36 = vpop.permute.xlu0 %2025  ;;  %v2198_v37 = vpop.permute.xlu1 %2197 }
 0x416   : > { %3995 = vmatpush3.xpose.msk.msra.mxu0 %vm1861_vm5, %v2026_v36 }
 0x417   : > { %4004 = vmatprep.subr.mxu0 %v5094_v10 }
 0x419   : > { %v2196_v39 = vpop.permute.xlu1 %2195 }
 0x41a   : > { %v2024_v38 = vpop.permute.xlu0 %2023 }
 0x41b   : > { %3997 = vmatmul.mubr.msk.f32.vlgmr.msra.gmra.mxu0 %vm1861_vm5, %v2024_v38 }
 0x41c   : > { %4005 = vmatpush3.xpose.msk.msra.mxu0 %vm1861_vm5, %v2198_v37  ;;  %4006 = vmatprep.mubr.msk.f32.mxu0 %vm5095_vm3, %v5094_v10 }
 0x41d   : > { %4014 = vmatprep.subr.mxu0 %v5094_v10  ;;  %v2367_v41 = vpop.permute.xlu1 %2366 }
 0x41e   : > { %v2369_v40 = vpop.permute.xlu0 %2368 }
 0x41f   : > { %4007 = vmatmul.mubr.msk.f32.vlgmr.msra.gmra.mxu0 %vm1861_vm5, %v2196_v39 }
 0x420   : > { %4015 = vmatpush3.xpose.msk.msra.mxu0 %vm1861_vm5, %v2369_v40  ;;  %4016 = vmatprep.mubr.msk.f32.mxu0 %vm5095_vm3, %v5094_v10 }
 0x421   : > { %4024 = vmatprep.subr.mxu0 %v5094_v10 }
 0x423   : > { %4017 = vmatmul.mubr.msk.f32.vlgmr.msra.gmra.mxu0 %vm1861_vm5, %v2367_v41 }
 0x424   : > { %4032 = vmatprep.mubr.msk.f32.mxu0 %vm5095_vm3, %v5094_v10  ;;  %4025 = vmatpush3.msra.mxu0 %v2541_v29 }
 0x425   : > { %4026 = vmatprep.subr.mxu0 %v5094_v10 }
 0x426   : > { %4027 = vmatpush3.msra.mxu0 %v2540_v30 }
 0x427   : > { %4028 = vmatprep.subr.mxu0 %v5094_v10 }
 0x428   : > { %4029 = vmatpush3.msra.mxu0 %v2539_v31 }
 0x429   : > { %4030 = vmatprep.subr.mxu0 %v5094_v10 }
 0x42a   : > { %4031 = vmatpush3.msra.mxu0 %v2538_v33  ;;  %v3853_v33 = vld [vmem:[%s6190_s10] ss:$0 sm:$0xff] }
 0x42b   : > { %4046 = vmatprep.subr.mxu0 %v5094_v10 }
 0x467   : > { %v1934_v42 = vpop.f32.mrf.mxu1 }
 0x468   : > { %v1938_v43 = vsel %vm1861_vm5, %v1934_v42, -inf }
 0x469   : > { %1939 = vmax.xlane.f32.xlu0 %v1938_v43  ;;  %v3988_v44 = vpop.f32.mrf.mxu1  ;;  %v3844_v43 = vld [vmem:[%s6184_s5] ss:$0 sm:$0xff] }
 0x4db   : > { %v2097_v45 = vpop.f32.mrf.mxu0 }
 0x4dc   : > { %v2101_v46 = vsel %vm1861_vm5, %v2097_v45, -inf }
 0x4dd   : > { %2102 = vmax.xlane.f32.xlu1 %v2101_v46  ;;  %v3998_v47 = vpop.f32.mrf.mxu0 }
 0x4df   : > { %v2269_v48 = vpop.f32.mrf.mxu0 }
 0x4e0   : > { %v2273_v49 = vsel %vm1861_vm5, %v2269_v48, -inf }
 0x4e1   : > { %v4008_v50 = vpop.f32.mrf.mxu0  ;;  %2274 = vmax.xlane.f32.xlu0 %v2273_v49 }
 0x4e3   : > { %v2440_v51 = vpop.f32.mrf.mxu0 }
 0x4e4   : > { %v2444_v52 = vsel %vm1861_vm5, %v2440_v51, -inf }
 0x4e5   : > { %v4018_v53 = vpop.f32.mrf.mxu0  ;;  %2445 = vmax.xlane.f32.xlu0 %v2444_v52 }
 0x4ee   : > { %2113 = vrot.lane.b32.xlu1 %v5822_v34, %s5097_s26  ;;  %s6196_s26 = sld [smem:[#allocation60_spill]] (!%p3854_p2) }
 0x4f2   : > { %v1940_v54 = vpop.xlane.xlu0 %1939 }
 0x4f3   : > { %v1941_v55 = vsub.f32 %v1934_v42, %v1940_v54  ;;  %v2656_v54 = vld [vmem:[%s5753_s21 + $0x18] sm:$0xff] }
 0x4f5   : > { %v1942_v56 = vmul.f32 1.442695, %v1941_v55  ;;  %v2655_v55 = vld [vmem:[%s5753_s21 + $0x10] sm:$0xff] }
 0x4f7   : > { %4377 = vpow2.f32 %v1942_v56  ;;  %v2653_v56 = vld [vmem:[%s5753_s21] sm:$0xff] }
 0x504   : > { %v4378_v57 = vpop.eup %4377 }
 0x505   : > { %v1944_v58 = vsel %vm1861_vm5, %v4378_v57, 0.0 }
 0x512   : > { %1945 = vadd.xlane.f32.xlu1 %v1944_v58  ;;  %v2744_v58 = vld [vmem:[%s5756_s20 + $0x30] sm:$0xff] }
 0x566   : > { %v2103_v59 = vpop.xlane.xlu1 %2102 }
 0x567   : > { %v2104_v60 = vsub.f32 %v2097_v45, %v2103_v59  ;;  %v2743_v59 = vld [vmem:[%s5756_s20 + $0x28] sm:$0xff] }
 0x569   : > { %v2105_v61 = vmul.f32 1.442695, %v2104_v60  ;;  %v2742_v60 = vld [vmem:[%s5756_s20 + $0x20] sm:$0xff] }
 0x56a   : > { %v2275_v62 = vpop.xlane.xlu0 %2274  ;;  %v2114_v11 = vpop.permute.xlu1 %2113 }
 0x56b   : > { %4379 = vpow2.f32 %v2105_v61  ;;  %v2276_v63 = vsub.f32 %v2269_v48, %v2275_v62  ;;  %v2741_v61 = vld [vmem:[%s5756_s20 + $0x18] sm:$0xff] }
 0x56d   : > { %v2277_v0 = vmul.f32 1.442695, %v2276_v63 }
 0x56e   : > { %v2446_v1 = vpop.xlane.xlu0 %2445 }
 0x56f   : > { %4381 = vpow2.f32 %v2277_v0  ;;  %v2447_v2 = vsub.f32 %v2440_v51, %v2446_v1 }
 0x571   : > { %v2448_v3 = vmul.f32 1.442695, %v2447_v2 }
 0x573   : > { %4383 = vpow2.f32 %v2448_v3 }
 0x578   : > { %v4380_v4 = vpop.eup %4379 }
 0x579   : > { %v2107_v5 = vsel %vm1861_vm5, %v4380_v4, 0.0 }
 0x57a   : > { %2108 = vadd.xlane.f32.xlu0 %v2107_v5 }
 0x57c   : > { %v4382_v6 = vpop.eup %4381 }
 0x57d   : > { %v2279_v7 = vsel %vm1861_vm5, %v4382_v6, 0.0 }
 0x57e   : > { %2280 = vadd.xlane.f32.xlu1 %v2279_v7  ;;  %v2740_v7 = vld [vmem:[%s5756_s20 + $0x10] sm:$0xff] }
 0x580   : > { %v4384_v8 = vpop.eup %4383 }
 0x581   : > { %v2450_v9 = vsel %vm1861_vm5, %v4384_v8, 0.0 }
 0x582   : > { %2451 = vadd.xlane.f32.xlu0 %v2450_v9  ;;  %v2738_v9 = vld [vmem:[%s5756_s20] sm:$0xff] }
 0x58f   : > { %2455 = vrot.lane.b32.xlu1 %v5822_v34, %s5098_s8  ;;  %s6197_s8 = sld [smem:[#allocation62_spill]] (!%p3854_p2) }
 0x598   : > { %2284 = vrot.lane.b32.xlu0 %v5822_v34, %s5096_s9  ;;  %s6195_s9 = sld [smem:[#allocation59_spill]] (!%p3854_p2) }
 0x59b   : > { %v1946_v12 = vpop.xlane.xlu1 %1945 }
 0x59c   : > { %4385 = vrcp.f32 %v1946_v12 }
 0x5a9   : > { %v4386_v13 = vpop.eup %4385 }
 0x5aa   : > { %v1948_v15 = vmul.f32 %v4386_v13, %v4378_v57  ;;  %v2745_v57 = vld [vmem:[%s5756_s20 + $0x38] sm:$0xff] }
 0x5ac   : > { %3992 = vmatmul.mubr.msk.f32.vlgmr.msra.gmra.mxu1 %vm1861_vm5, %v1948_v15 }
 0x5ad   : > { %4000 = vmatpush3.msra.mxu1 %v2114_v11  ;;  %4001 = vmatprep.mubr.msk.f32.mxu1 %vm5095_vm3, %v5094_v10  ;;  %v3848_v11 = vld [vmem:[%s6187_s7] ss:$0 sm:$0xff] }
 0x5ae   : > { %4009 = vmatprep.subr.mxu1 %v5094_v10 }
 0x603   : > { %v2109_v16 = vpop.xlane.xlu0 %2108 }
 0x604   : > { %4387 = vrcp.f32 %v2109_v16 }
 0x607   : > { %v2281_v17 = vpop.xlane.xlu1 %2280 }
 0x608   : > { %4389 = vrcp.f32 %v2281_v17  ;;  %v3850_v17 = vld [vmem:[%s6188_s4] ss:$0 sm:$0xff] }
 0x60b   : > { %v2452_v18 = vpop.xlane.xlu0 %2451  ;;  %v2456_v24 = vpop.permute.xlu1 %2455 }
 0x60c   : > { %4391 = vrcp.f32 %v2452_v18 }
 0x60f   : > { %v2285_v21 = vpop.permute.xlu0 %2284 }
 0x611   : > { %v4388_v19 = vpop.eup %4387 }
 0x612   : > { %v2111_v20 = vmul.f32 %v4388_v19, %v4380_v4  ;;  %v3847_v4 = vld [vmem:[%s6186_s28] ss:$0 sm:$0xff] }
 0x614   : > { %4002 = vmatmul.mubr.msk.f32.vlgmr.msra.gmra.mxu1 %vm1861_vm5, %v2111_v20 }
 0x615   : > { %v4390_v22 = vpop.eup %4389  ;;  %4010 = vmatpush3.msra.mxu1 %v2285_v21  ;;  %4011 = vmatprep.mubr.msk.f32.mxu1 %vm5095_vm3, %v5094_v10 }
 0x616   : > { %4019 = vmatprep.subr.mxu1 %v5094_v10  ;;  %v2283_v23 = vmul.f32 %v4390_v22, %v4382_v6 }
 0x618   : > { %4012 = vmatmul.mubr.msk.f32.vlgmr.msra.gmra.mxu1 %vm1861_vm5, %v2283_v23 }
 0x619   : > { %v4392_v25 = vpop.eup %4391  ;;  %4020 = vmatpush3.msra.mxu1 %v2456_v24  ;;  %4021 = vmatprep.mubr.msk.f32.mxu1 %vm5095_vm3, %v5094_v10 }
 0x61a   : > { %v2454_v26 = vmul.f32 %v4392_v25, %v4384_v8  ;;  %4035 = vmatprep.subr.mxu1 %v5094_v10  ;;  %v2739_v8 = vld [vmem:[%s5756_s20 + $0x8] sm:$0xff]  ;;  %s6189_s20 = scalar_lea.vmem [#allocation21], %s5710_s14 }
 0x61b   : > { %v3852_v31 = vld [vmem:[%s6189_s20] ss:$0 sm:$0xff] }
 0x61c   : > { %4022 = vmatmul.mubr.msk.f32.vlgmr.msra.gmra.mxu1 %vm1861_vm5, %v2454_v26 }
 0x61d   : > { %4043 = vmatprep.mubr.msk.f32.mxu1 %vm5095_vm3, %v5094_v10  ;;  %4036 = vmatpush3.msra.mxu1 %v2656_v54 }
 0x61e   : > { %4037 = vmatprep.subr.mxu1 %v5094_v10 }
 0x61f   : > { %4038 = vmatpush3.msra.mxu1 %v2655_v55 }
 0x620   : > { %4039 = vmatprep.subr.mxu1 %v5094_v10 }
 0x66c   : > { %v2018_v27 = vpop.f32.mrf.mxu1 }
 0x66d   : > { %2022 = vst.msk [vmem:[#allocation3] sm:$0xff] %vm1861_vm5, %v2018_v27 }
 0x66e   : > { %v3993_v28 = vpop.f32.mrf.mxu1 }
 0x6d4   : > { %v2185_v32 = vpop.f32.mrf.mxu1 }
 0x6d5   : > { %2190 = vrot.lane.b32.xlu1 %v2185_v32, %s5099_s0  ;;  %s6199_s0 = sld [smem:[#allocation58_spill]] (!%p3854_p2) }
 0x6d6   : > { %v4003_v34 = vpop.f32.mrf.mxu1 }
 0x6d8   : > { %v2356_v35 = vpop.f32.mrf.mxu1 }
 0x6d9   : > { %2361 = vrot.lane.b32.xlu0 %v2356_v35, %s5100_s3  ;;  %s5104_s3 = smov (!%p3854_p2), 8  }
 0x6da   : > { %v4013_v36 = vpop.f32.mrf.mxu1 }
 0x6dc   : > { %v2527_v37 = vpop.f32.mrf.mxu1 }
 0x6dd   : > { %2532 = vrot.lane.b32.xlu1 %v2527_v37, %s5101_s22 }
 0x6de   : > { %v4023_v38 = vpop.f32.mrf.mxu1 }
 0x747   : > { %v2191_v39 = vpop.permute.xlu1 %2190 }
 0x748   : > { %2194 = vst.msk [vmem:[#allocation3] sm:$0xff] %vm2193_vm6, %v2191_v39 }
 0x74b   : > { %v2362_v40 = vpop.permute.xlu0 %2361 }
 0x74c   : > { %2365 = vst.msk [vmem:[#allocation3] sm:$0xff] %vm2364_vm7, %v2362_v40 }
 0x74f   : > { %v2533_v41 = vpop.permute.xlu1 %2532 }
 0x750   : > { %2536 = vst.msk [vmem:[#allocation3] sm:$0xff] %vm2535_vm8, %v2533_v41 }
 0x757   : > { %v2537_v42 = vld [vmem:[#allocation3] sm:$0xff] }
 0x758   : > { %4033 = vmatmul.mubr.msk.f32.vlgmr.msra.gmra.mxu0 %vm1624_vm4, %v2537_v42 }
 0x759   : > { %4062 = vmatprep.mubr.msk.f32.mxu0 %vm5095_vm3, %v5094_v10  ;;  %4047 = vmatpush3.msra.mxu0 %v2745_v57 }
 0x75a   : > { %4048 = vmatprep.subr.mxu0 %v5094_v10 }
 0x75b   : > { %4049 = vmatpush3.msra.mxu0 %v2744_v58 }
 0x75c   : > { %4050 = vmatprep.subr.mxu0 %v5094_v10 }
 0x75d   : > { %4051 = vmatpush3.msra.mxu0 %v2743_v59 }
 0x75e   : > { %4052 = vmatprep.subr.mxu0 %v5094_v10 }
 0x75f   : > { %4053 = vmatpush3.msra.mxu0 %v2742_v60 }
 0x760   : > { %4054 = vmatprep.subr.mxu0 %v5094_v10 }
 0x761   : > { %4055 = vmatpush3.msra.mxu0 %v2741_v61 }
 0x762   : > { %4056 = vmatprep.subr.mxu0 %v5094_v10 }
 0x763   : > { %4057 = vmatpush3.msra.mxu0 %v2740_v7 }
 0x764   : > { %4058 = vmatprep.subr.mxu0 %v5094_v10 }
 0x765   : > { %4059 = vmatpush3.msra.mxu0 %v2739_v8 }
 0x766   : > { %4060 = vmatprep.subr.mxu0 %v5094_v10 }
 0x767   : > { %4061 = vmatpush3.msra.mxu0 %v2738_v9 }
 0x818   : > { %v2618_v44 = vpop.f32.mrf.mxu0 }
 0x819   : > { %v2619_v45 = vadd.f32 %v3844_v43, %v2618_v44 }
 0x81a   : > { %v4034_v46 = vpop.f32.mrf.mxu0 }
 0x81b   : > { %v2622_v47 = vadd.f32 %v2619_v45, %v5773_v14  ;;  %v2654_v14 = vld [vmem:[%s5753_s21 + $0x8] sm:$0xff]  ;;  %s6185_s21 = scalar_lea.vmem [#allocation17], %s5710_s14  ;;  %s6193_s14 = scalar_lea.vmem (!%p3854_p2), [#allocation9], %s5683_s6 }
 0x81c   : > { %4040 = vmatpush3.msra.mxu1 %v2654_v14  ;;  %v3846_v2 = vld [vmem:[%s6185_s21] ss:$0 sm:$0xff] }
 0x81d   : > { %v2625_v48 = vsel %vm1624_vm4, %v2622_v47, 0.0  ;;  %4041 = vmatprep.subr.mxu1 %v5094_v10 }
 0x81e   : > { %2626 = vadd.xlane.f32.xlu0 %v2625_v48  ;;  %4042 = vmatpush3.msra.mxu1 %v2653_v56 }
 0x8a7   : > { %v2627_v49 = vpop.xlane.xlu0 %2626 }
 0x8a8   : > { %v2629_v50 = vmul.f32 0.03125, %v2627_v49 }
 0x8aa   : > { %v2630_v51 = vsub.f32 %v2622_v47, %v2629_v50 }
 0x8ac   : > { %v2631_v52 = vmul.f32 %v2630_v51, %v2630_v51 }
 0x8ae   : > { %v2632_v53 = vsel %vm1624_vm4, %v2631_v52, 0.0 }
 0x8af   : > { %2633 = vadd.xlane.f32.xlu1 %v2632_v53 }
 0x938   : > { %v2634_v62 = vpop.xlane.xlu1 %2633 }
 0x939   : > { %v2635_v63 = vmul.f32 0.03125, %v2634_v62 }
 0x93b   : > { %v2636_v0 = vadd.f32 1e-05, %v2635_v63 }
 0x93d   : > { %4393 = vrsqrt.f32 %v2636_v0 }
 0x94a   : > { %v4394_v1 = vpop.eup %4393 }
 0x94b   : > { %v2638_v3 = vmul.f32 %v4394_v1, %v2630_v51 }
 0x94d   : > { %v2645_v5 = vmul.f32 %v3846_v2, %v2638_v3 }
 0x94f   : > { %v2652_v6 = vadd.f32 %v3847_v4, %v2645_v5 }
 0x951   : > { %4044 = vmatmul.mubr.msk.f32.vlgmr.msra.gmra.mxu1 %vm1624_vm4, %v2652_v6 }
 0xa11   : > { %v2733_v12 = vpop.f32.mrf.mxu1 }
 0xa12   : > { %v2734_v13 = vadd.f32 %v3848_v11, %v2733_v12 }
 0xa13   : > { %v4045_v15 = vpop.f32.mrf.mxu1 }
 0xa14   : > { %v2737_v16 = vmax.f32 %v2734_v13, 0.0 }
 0xa16   : > { %4063 = vmatmul.mubr.msk.f32.vlgmr.msra.gmra.mxu0 %vm2753_vm9, %v2737_v16 }
 0xad6   : > { %v2823_v18 = vpop.f32.mrf.mxu0 }
 0xad7   : > { %v2824_v19 = vadd.f32 %v3850_v17, %v2823_v18 }
 0xad8   : > { %v4064_v20 = vpop.f32.mrf.mxu0 }
 0xad9   : > { %v2827_v21 = vadd.f32 %v2824_v19, %v2652_v6 }
 0xadb   : > { %v2830_v22 = vsel %vm1624_vm4, %v2827_v21, 0.0 }
 0xadc   : > { %2831 = vadd.xlane.f32.xlu0 %v2830_v22 }
 0xb65   : > { %v2832_v10 = vpop.xlane.xlu0 %2831 }
 0xb66   : > { %v2833_v23 = vmul.f32 0.03125, %v2832_v10 }
 0xb68   : > { %v2834_v24 = vsub.f32 %v2827_v21, %v2833_v23 }
 0xb6a   : > { %v2835_v25 = vmul.f32 %v2834_v24, %v2834_v24 }
 0xb6c   : > { %v2836_v26 = vsel %vm1624_vm4, %v2835_v25, 0.0 }
 0xb6d   : > { %2837 = vadd.xlane.f32.xlu0 %v2836_v26 }
 0xbf6   : > { %v2838_v27 = vpop.xlane.xlu0 %2837 }
 0xbf7   : > { %v2839_v28 = vmul.f32 0.03125, %v2838_v27 }
 0xbf9   : > { %v2840_v29 = vadd.f32 1e-05, %v2839_v28 }
 0xbfb   : > { %4395 = vrsqrt.f32 %v2840_v29 }
 0xc08   : > { %v4396_v30 = vpop.eup %4395 }
 0xc09   : > { %v2842_v32 = vmul.f32 %v4396_v30, %v2834_v24 }
 0xc0b   : > { %v2849_v34 = vmul.f32 %v3852_v31, %v2842_v32  ;;  %2861 = sbr.rel (%p3854_p2) target bundleno = 3817 (0xee9), region = 224 }
 0xc0d   : > { %v2856_v35 = vadd.f32 %v3853_v33, %v2849_v34 }
 0xc0f   : > { %2857 = vst.msk [vmem:[#allocation2] sm:$0xff] %vm1624_vm4, %v2856_v35 }
 0xc10   : > { %v2875_v36 = vld [vmem:[%s6192_s13 + $0x18] sm:$0xff]  ;;  %v2876_v37 = vld [vmem:[#allocation23] sm:$0xff]  ;;  %v2862_v38 = vsel %vm1624_vm4, %v2856_v35, 0.0  ;;  %v5102_v39 = vmov 0.0   ;;  %v2874_v40 = vld [vmem:[%s6192_s13 + $0x10] sm:$0xff]  ;;  %vm5103_vm10 = vmmov 0  }
 0xc11   : > { %4070 = vmatprep.subr.mxu1 %v5102_v39  ;;  %4065 = vmatprep.subr.mxu0 %v5102_v39  ;;  %v5933_v41 = vld [vmem:[%s6193_s14] sm:$0x1]  ;;  %v2863_v42 = vrot.slane %v2862_v38, 4  ;;  %v2873_v43 = vld [vmem:[%s6192_s13 + $0x8] sm:$0xff]  ;;  %v3028_v51 = vld [vmem:[%s6194_s17 + $0x10] sm:$0xf] }
 0xc12   : > { %4071 = vmatpush3.msra.mxu1 %v2875_v36  ;;  %4066 = vmatpush3.msra.mxu0 %v2876_v37  ;;  %v2872_v45 = vld [vmem:[%s6192_s13] sm:$0xff]  ;;  %vm3034_vm11 = vcmask 1043456   ;;  %v3111_v52 = vld [vmem:[%s6195_s9 + $0x18] sm:$0xff]  ;;  %v3027_v53 = vld [vmem:[%s6194_s17 + $0x8] sm:$0xff]  ;;  %vm3030_vm12 = vcmask 162816   ;;  %vm3341_vm13 = vcmask 253952  }
 0xc13   : > { %4072 = vmatprep.subr.mxu1 %v5102_v39  ;;  %4067 = vmatprep.mubr.msk.f32.mxu0 %vm5103_vm10, %v5102_v39  ;;  %v2864_v44 = vadd.f32 %v2863_v42, %v2862_v38  ;;  %v3110_v54 = vld [vmem:[%s6195_s9 + $0x10] sm:$0xff]  ;;  %v3026_v55 = vld [vmem:[%s6194_s17] sm:$0xff]  ;;  %v3109_v14 = vld [vmem:[%s6195_s9 + $0x8] sm:$0xff] }
 0xc14   : > { %4073 = vmatpush3.msra.mxu1 %v2874_v40  ;;  %4068 = vmatmul.mubr.msk.f32.vlgmr.msra.gmra.mxu0 %vm1861_vm5, %v5933_v41  ;;  %v3108_v56 = vld [vmem:[%s6195_s9] sm:$0xff]  ;;  %v3023_v60 = vld [vmem:[#allocation24] sm:$0x1]  ;;  %v3257_v5 = vld [vmem:[%s6197_s8 + $0x8] sm:$0xff] }
 0xc15   : > { %4074 = vmatprep.subr.mxu1 %v5102_v39  ;;  %4078 = vmatprep.mubr.msk.f32.mxu1 %vm5103_vm10, %v5102_v39  ;;  %v2865_v46 = vrot.slane %v2864_v44, 2  ;;  %v3112_v1 = vld [vmem:[%s6196_s26] sm:$0xff]  ;;  %v3258_v4 = vld [vmem:[%s6197_s8 + $0x10] sm:$0xf] }
 0xc16   : > { %4075 = vmatpush3.msra.mxu1 %v2873_v43  ;;  %4081 = vmatprep.subr.mxu0 %v5102_v39  ;;  %v3256_v6 = vld [vmem:[%s6197_s8] sm:$0xff]  ;;  %v3253_v11 = vld [vmem:[#allocation25] sm:$0x1] }
 0xc17   : > { %4076 = vmatprep.subr.mxu1 %v5102_v39  ;;  %v2866_v47 = vadd.f32 %v2865_v46, %v2864_v44  ;;  %4087 = vmatprep.mubr.msk.f32.mxu0 %vm5103_vm10, %v5102_v39  ;;  %v3259_v17 = vld [vmem:[%s6198_s12] sm:$0x1] }
 0xc18   : > { %4077 = vmatpush3.msra.mxu1 %v2872_v45  ;;  %4082 = vmatpush3.msk.msra.mxu0 %vm3034_vm11, %v3028_v51  ;;  %v3029_v21 = vld [vmem:[%s6199_s0] sm:$0x1] }
 0xc19   : > { %v2867_v48 = vrot.slane %v2866_v47, 1  ;;  %4095 = vmatprep.subr.mxu1 %v5102_v39  ;;  %4083 = vmatprep.subr.mxu0 %v5102_v39 }
 0xc1a   : > { %4084 = vmatpush3.msra.mxu0 %v3027_v53 }
 0xc1b   : > { %v2868_v49 = vadd.f32 %v2867_v48, %v2866_v47  ;;  %4085 = vmatprep.subr.mxu0 %v5102_v39 }
 0xc1c   : > { %4086 = vmatpush3.msra.mxu0 %v3026_v55 }
 0xc1d   : > { %v2870_v50 = vmul.f32 0.125, %v2868_v49  ;;  %4090 = vmatprep.subr.mxu0 %v5102_v39 }
 0xc1f   : > { %4079 = vmatmul.mubr.msk.f32.vlgmr.msra.gmra.mxu1 %vm1624_vm4, %v2870_v50 }
 0xc20   : > { %4103 = vmatprep.mubr.msk.f32.mxu1 %vm5103_vm10, %v5102_v39  ;;  %4096 = vmatpush3.msra.mxu1 %v3111_v52 }
 0xc21   : > { %4097 = vmatprep.subr.mxu1 %v5102_v39 }
 0xc22   : > { %4098 = vmatpush3.msra.mxu1 %v3110_v54 }
 0xc23   : > { %4099 = vmatprep.subr.mxu1 %v5102_v39 }
 0xc24   : > { %4100 = vmatpush3.msra.mxu1 %v3109_v14 }
 0xc25   : > { %4101 = vmatprep.subr.mxu1 %v5102_v39 }
 0xc26   : > { %4102 = vmatpush3.msra.mxu1 %v3108_v56 }
 0xc27   : > { %4104 = vmatmul.mubr.msk.f32.vlgmr.msra.gmra.mxu1 %vm1624_vm4, %v2870_v50 }
 0xcd4   : > { %v2946_v57 = vpop.f32.mrf.mxu0 }
 0xcd6   : > { %v4069_v58 = vpop.f32.mrf.mxu0 }
 0xcdf   : > { %v3019_v59 = vpop.f32.mrf.mxu1 }
 0xce0   : > { %v3020_v61 = vadd.f32 %v3019_v59, %v2946_v57 }
 0xce1   : > { %v4080_v62 = vpop.f32.mrf.mxu1 }
 0xce2   : > { %v3024_v63 = vadd.f32 %v3023_v60, %v3020_v61 }
 0xce4   : > { %v3025_v0 = vmax.f32 %v3024_v63, 0.0 }
 0xce6   : > { %4088 = vmatmul.mubr.msk.f32.vlgmr.msra.gmra.mxu0 %vm3030_vm12, %v3025_v0 }
 0xce7   : > { %4091 = vmatpush3.msra.mxu0 %v3112_v1  ;;  %4092 = vmatprep.mubr.msk.f32.mxu0 %vm5103_vm10, %v5102_v39  ;;  %v3249_v2 = vpop.f32.mrf.mxu1 }
 0xce8   : > { %4106 = vmatprep.subr.mxu0 %v5102_v39 }
 0xce9   : > { %v4105_v3 = vpop.f32.mrf.mxu1 }
 0xcea   : > { %4093 = vmatmul.mubr.msk.f32.vlgmr.msra.gmra.mxu0 %vm1861_vm5, %v5933_v41 }
 0xceb   : > { %4112 = vmatprep.mubr.msk.f32.mxu0 %vm5103_vm10, %v5102_v39  ;;  %4107 = vmatpush3.msk.msra.mxu0 %vm3034_vm11, %v3258_v4 }
 0xcec   : > { %4108 = vmatprep.subr.mxu0 %v5102_v39 }
 0xced   : > { %4109 = vmatpush3.msra.mxu0 %v3257_v5 }
 0xcee   : > { %4110 = vmatprep.subr.mxu0 %v5102_v39 }
 0xcef   : > { %4111 = vmatpush3.msra.mxu0 %v3256_v6 }
 0xda6   : > { %v3104_v7 = vpop.f32.mrf.mxu0 }
 0xda7   : > { %v3105_v22 = vadd.f32 %v3104_v7, %v3029_v21 }
 0xda8   : > { %v4089_v8 = vpop.f32.mrf.mxu0 }
 0xdaa   : > { %v3179_v9 = vpop.f32.mrf.mxu0 }
 0xdab   : > { %v3250_v12 = vadd.f32 %v3249_v2, %v3179_v9 }
 0xdac   : > { %v4094_v13 = vpop.f32.mrf.mxu0 }
 0xdad   : > { %v3254_v15 = vadd.f32 %v3253_v11, %v3250_v12 }
 0xdaf   : > { %v3255_v16 = vmax.f32 %v3254_v15, 0.0 }
 0xdb1   : > { %4113 = vmatmul.mubr.msk.f32.vlgmr.msra.gmra.mxu0 %vm3030_vm12, %v3255_v16 }
 0xe71   : > { %v3332_v18 = vpop.f32.mrf.mxu0 }
 0xe72   : > { %v3333_v19 = vadd.f32 %v3332_v18, %v3259_v17 }
 0xe73   : > { %v4114_v20 = vpop.f32.mrf.mxu0 }
 0xe74   : > { %3337 = vrot.lane.b32.xlu0 %v3333_v19, %s5104_s3 }
 0xee6   : > { %v3338_v10 = vpop.permute.xlu0 %3337 }
 0xee7   : > { %v3340_v23 = vsel %vm1861_vm5, %v3105_v22, %v3338_v10 }
 0xee8   : > { %3342 = vst.msk [vmem:[%s1490_s18] sm:$0x1] %vm3341_vm13, %v3340_v23 }
 0xee9 PF: > { %s6200_s22 = sld [smem:[#allocation68_spill]]  ;;  %s3356_s4 = sshll.u32 %s1490_s18, 4  ;;  %s3357_s4 = int_to_ptr.vmem [resolvable:$true] %s3356_s4 }
 0xeea   : > { %s6201_s5 = sld [smem:[#allocation64_spill]]  ;;  %s3344_s20 = scalar_lea.sflag [#allocation6], %s5683_s6 }
 0xeeb   : > { %s6202_s21 = sld [smem:[#allocation75_spill]]  ;;  %s4889_s10 = scalar_lea.vmem %s3357_s4, 16 }
 0xeec   : > { %p4890_p0 = scmp.ne.s32.totalorder %s3357_s4, %s4889_s10  ;;  %s5105_s16 = smov [#allocation27]  }
 0xeed   : > { %s4893_s14 = sshll.u32 %s5105_s16, 4  ;;  %s4894_s14 = int_to_ptr.vmem [resolvable:$false] %s4893_s14 }
 0xeee   : > { %s4895_s26 = scalar_lea.vmem %s4894_s14, 32  ;;  %p4896_p8 = scmp.lt.s32.totalorder %s3357_s4, %s4894_s14 }
 0xeef   : > { %s3863_s28 = sshll.u32 %s6200_s22, 4  ;;  %p4897_p10 = scmp.lt.s32.totalorder %s4895_s26, %s4889_s10 }
 0xef0   : > { %s3354_s7 = scalar_lea.hbm %s6201_s5, %s3863_s28 }
 0xef1   : > { %p6203_p11 = scmp.ne.s32.totalorder %s6202_s21, 0  ;;  %p4898_p6 = por %p4897_p10, %p4896_p8 }
 0xef3   : > { %p4891_p1 = pnand %p4890_p0, %p6203_p11 }
 0xef5   : > { %p4892_p13 = pneg %p4891_p1 }
 0xef7   : > { %p4899_p4 = pnand %p4898_p6, %p4892_p13 }
 0xef9   : > { %4902 = shalt.err (!%p4899_p4)
}
 0xefa   : > { %s4903_s12 = scalar_lea.hbm %s3354_s7, 16  ;;  %s4907_s18 = scalar_lea.hbm %s6201_s5, 32 }
 0xefb   : > { %p4904_p9 = scmp.ne.s32.totalorder %s3354_s7, %s4903_s12  ;;  %p4908_p3 = scmp.lt.s32.totalorder %s3354_s7, %s6201_s5 }
 0xefc   : > { %p4909_p5 = scmp.lt.s32.totalorder %s4907_s18, %s4903_s12 }
 0xefd   : > { %p4905_p7 = pnand %p4904_p9, %p6203_p11 }
 0xefe   : > { %p4910_p2 = por %p4909_p5, %p4908_p3 }
 0xeff   : > { %p4906_p12 = pneg %p4905_p7 }
 0xf01   : > { %p4911_p0 = pnand %p4910_p2, %p4906_p12 }
 0xf03   : > { %4914 = shalt.err (!%p4911_p0)
}
 0xf04   : > { %4163 = dma.vmem_to_hbm [thread:$0]  (%p6203_p11), %s3357_s4, 16, %s3354_s7, %s3344_s20  }
 0xf05 PF: > { %s6204_s6 = sld [smem:[#allocation66_spill]]  ;;  %p4238_p1 = scmp.ge.s32.totalorder %s5041_s15, 2 }
 0xf06   : > { %s6205_s0 = sld [smem:[#allocation76_spill]] }
 0xf0b   : > { %s3368_s3 = sand.u32 1, %s6204_s6  }
 0xf0c   : > { %p6206_p13 = scmp.ne.s32.totalorder %s6205_s0, 0  ;;  %s3369_s22 = scalar_lea.sflag [#allocation6], %s3368_s3 }
 0xf0e   : > { %p4222_p8 = pnand %p4238_p1, %p6206_p13 }
 0xf10   : > { %p4223_p10 = pneg %p4222_p8 }
 0xf12   : > { %4996 = dma.done.wait (%p4223_p10), %s3369_s22, 16  }
 0xf13   : > { %4998 = vsyncadd (%p4223_p10), %s3369_s22, 4294967280  ;;  %s82_s15 = sadd.s32 1, %s5041_s15   ;;  %s6207_s28 = sld [smem:[#allocation65_spill]] }
 0xf14   : > { %p79_p6 = scmp.ge.s32.totalorder %s82_s15, 6   ;;  %s6208_s26 = sld [smem:[#allocation72_spill]] }
 0xf15   : > { %s6209_s21 = sld [smem:[#allocation73_spill]]  ;;  %s6213_s22 = smov %s5005_s23 }
 0xf16   : > { %s6210_s0 = sld [smem:[#allocation69_spill]]  ;;  %s6218_s7 = smov %s5037_s11 }
 0xf17   : > { %s6211_s10 = sld [smem:[#allocation70_spill]] }
 0xf18   : > { %s6212_s4 = sld [smem:[#allocation71_spill]] }
 0xf19   : > { %s6214_s23 = smov %s6207_s28  ;;  %s6215_s28 = smov %s5017_s1 }
 0xf1a   : > { %s6216_s1 = smov %s5021_s2  ;;  %81 = sbr.rel (!%p79_p6) target bundleno = 77 (0x4d), region = 391 }
 0xf1b   : > { %s6217_s2 = smov %s6209_s21 }
 0xf1e   : > { %s6219_s11 = smov %s6212_s4 }
 0xf1f   :  { %3373 = vsyncpa [#allocation5], 1 }
 0xf20   :  { %3375 = vsyncpa [#allocation5 + $0x1], 1 }
 0xf21   :  { %3376 = vsyncpa [#allocation8], 1 }
 0xf22   :  { %3377 = vsyncpa [#allocation12], 1 }
 0xf23   :  { %3378 = vsyncpa [#allocation26], 1 }
 0xf24   :  { %3379 = vsyncpa [#allocation6], 1 }
 0xf25   :  { %3381 = vsyncpa [#allocation6 + $0x1], 1 }

</bundles_post_ra>
